<compile_context>
chip_gen: v7x
topology: tpu7x:2x2x1
jax: 0.10.0
libtpu: 0.0.40
codegen_flags: <defaults>
</compile_context>

<pallas_src>
import functools

import jax
import jax.numpy as jnp
from jax.experimental import pallas as pl
from jax.experimental.pallas import tpu as pltpu


def _round_up(a: int, b: int) -> int:
    return -(-a // b) * b


def _bn_relu_conv_kernel(*refs, sz, pad, H, W, Wacc, has_halo):
    """One (batch, row-block) tile: BN-affine + ReLU + border-zero + KxK conv.

    Refs (VMEM blocks delivered by BlockSpec, then scratch):
      xa_ref    (1, TH, Wp, Cin)     main row block of the spatially padded input
      xb_ref    (1, HB, Wp, Cin)     next HB rows (halo source), only when sz > 1
      scale_ref (1, 1, Cin)          BN scale = gamma * rsqrt(var + eps)   (compute dtype)
      shift_ref (1, 1, Cin)          BN shift + style feature, per (n, c)  (compute dtype)
      w_ref     (sz*sz, Cin, Cout)   conv weight, tap-major (t = dy*sz + dx)
      b_ref     (1, Cout)            conv bias (f32)
      out_ref   (1, TH, Wout, Cout)
      win_ref   (TH[+HB], Wp, Cin)   VMEM scratch: activated (post BN/ReLU/mask) window
    """
    if has_halo:
        xa_ref, xb_ref, scale_ref, shift_ref, w_ref, b_ref, out_ref, win_ref = refs
    else:
        xa_ref, scale_ref, shift_ref, w_ref, b_ref, out_ref, win_ref = refs
        xb_ref = None

    halo = sz - 1
    _, TH, Wp, Cin = xa_ref.shape
    _, _, Wout, Cout = out_ref.shape
    HB = xb_ref.shape[1] if has_halo else 0
    TH_in = TH + halo

    r = pl.program_id(1)
    row0 = r * TH
    scale = scale_ref[...]                                   # (1, 1, Cin)
    shift = shift_ref[...]                                   # (1, 1, Cin)

    # Border mask: Conv2d zero-pads its input AFTER BN+ReLU, so the pad frame must be
    # re-zeroed post-activation.  Small per-axis predicates; the only full-size op is the
    # final select inside `activate`.
    col = jax.lax.broadcasted_iota(jnp.int32, (1, Wp, 1), 1)
    col_ok = (col >= pad) & (col < pad + W)                  # grid-invariant (1, Wp, 1)

    def activate(x_block, row_start, rows):
        ridx = row_start + jax.lax.broadcasted_iota(jnp.int32, (rows, 1, 1), 0)
        row_ok = (ridx >= pad) & (ridx < pad + H)            # (rows, 1, 1)
        v = jnp.maximum(x_block * scale + shift, 0)          # compute-dtype VALU math
        return jnp.where(row_ok & col_ok, v, 0)

    # Assemble the activated window directly into scratch (no halo concatenate: the two
    # stores below are exactly the activation stores we would need anyway).
    win_ref[0:TH] = activate(xa_ref[0], row0, TH)
    if has_halo:
        win_ref[TH:TH + HB] = activate(xb_ref[0], row0 + TH, HB)

    # KxK conv: sz*sz MXU matmuls at FIXED M = TH * Wacc, f32 accumulation.
    #   - dx shift: one shifted window read per dx (sz copies total, not sz*sz per-tap
    #     slice+reshape repacks); columns >= Wout are junk and discarded at the store.
    #   - dy shift: free leading-axis slice of the shifted window.
    #   - Wacc is a multiple of 8, so the (TH, Wacc, Cin) -> (TH*Wacc, Cin) merge is free.
    acc = jnp.zeros((TH * Wacc, Cout), jnp.float32)
    for dx in range(sz):
        shifted = win_ref[0:TH_in, dx:dx + Wacc, :]          # (TH_in, Wacc, Cin)
        for dy in range(sz):
            lhs = shifted[dy:dy + TH].reshape(TH * Wacc, Cin)
            acc = acc + jnp.dot(lhs, w_ref[dy * sz + dx],
                                preferred_element_type=jnp.float32)

    out = (acc + b_ref[...]).reshape(TH, Wacc, Cout)         # free split (Wacc % 8 == 0)
    # NOTE: for lane/sublane-friendly stores keep Wout a multiple of 8 (true for the
    # cellpose shapes, W=224); otherwise the width slice below costs a small repack.
    out_ref[0] = out[:, :Wout, :].astype(out_ref.dtype)


def batchconvstyle_forward(params, style, x, y=None, *, sz, eps=1e-5,
                           block_rows=None, compute_dtype=jnp.bfloat16,
                           out_dtype=jnp.float32, output_layout="NCHW"):
    """Forward pass.  style: (N, S), x: (N, Cin, H, W) NCHW.

    compute_dtype: bf16 on v6e/v7x (bf16 VALU + MXU fast path); use float32 on v5e.
    out_dtype / output_layout: f32 + NCHW match the PyTorch module; bf16 + NHWC halve
    writeback and skip the final transpose when stacking these blocks.
    """
    if y is not None:                              # matches `if y is not None: x = x + y`
        x = x + y
    # TODO(synk): mkldnn branch (to_dense / to_mkldnn) is CPU layout plumbing; no TPU analog.
    # TODO(synk): conv_1D=True (Conv1d/BatchNorm1d) variant not implemented here.

    x = x.astype(jnp.float32)
    N, Cin, H, W = x.shape
    Cout = params["conv_w"].shape[0]
    assert Cin == Cout, (
        "batchconvstyle broadcast-adds a (N, out_channels) style feature onto the "
        f"(N, in_channels, H, W) input; requires in_channels == out_channels, got "
        f"in={Cin}, out={Cout}.")
    pad = sz // 2
    Hout = H + 2 * pad - sz + 1
    Wout = W + 2 * pad - sz + 1
    halo = sz - 1

    # ---- hoisted, run-once work -------------------------------------------------------
    # 1) style linear (tiny matmul).
    feat = (style.astype(jnp.float32) @ params["lin_w"].astype(jnp.float32).T
            + params["lin_b"].astype(jnp.float32))                           # (N, Cin)
    # 2) training-mode BatchNorm2d batch statistics of (x + feat), computed in a SINGLE
    #    pass over x: per-(n, c) sum and sum-of-squares; feat terms added analytically.
    #    (NOTE: stats use f32 x while the kernel normalizes the compute_dtype copy; the
    #    tiny quantization bias is within the bf16 tolerance.)
    hw = float(H * W)
    s1 = jnp.sum(x, axis=(2, 3))                                             # (N, C)
    s2 = jnp.sum(x * x, axis=(2, 3))                                         # (N, C)
    m_x = s1 / hw                                                            # E_hw[x]
    mean = jnp.mean(m_x + feat, axis=0)                                      # (C,)
    ex2 = jnp.mean(s2 / hw + 2.0 * feat * m_x + feat * feat, axis=0)         # E[(x+f)^2]
    var = ex2 - mean * mean                                                  # biased var
    gamma = params["bn_gamma"].astype(jnp.float32)
    beta = params["bn_beta"].astype(jnp.float32)
    scale = gamma * jax.lax.rsqrt(var + eps)                                 # (C,)
    # Fold the style broadcast-add into the per-(batch, channel) BN shift:
    #   BN(x + feat) = x*scale + (beta - mean*scale + feat*scale)
    shift = (beta - mean * scale)[None, :] + feat * scale[None, :]           # (N, C)

    # ---- tile geometry ------------------------------------------------------------------
    HB = _round_up(max(halo, 1), 8)                      # halo block rows (multiple of 8)
    Wacc = _round_up(Wout, 8)                            # in-kernel working width
    Wp = Wacc + (_round_up(halo, 8) if halo else 0)      # padded input width (>= W + 2*pad)

    bpe = jnp.dtype(compute_dtype).itemsize
    obpe = jnp.dtype(out_dtype).itemsize

    def step_bytes(th):                                  # honest per-grid-step VMEM estimate
        th_in = th + (HB if halo else 0)
        return (2 * th * Wp * Cin * bpe                              # main block (x2 buf)
                + (2 * HB * Wp * Cin * bpe if halo else 0)           # halo block (x2 buf)
                + th_in * Wp * Cin * bpe                             # window scratch
                + 2 * (th + halo) * Wacc * Cin * bpe                 # shifted-window temps
                + th * Wacc * Cout * 4                               # f32 accumulator
                + 2 * th * Wout * Cout * obpe                        # output block (x2 buf)
                + 2 * sz * sz * Cin * Cout * bpe                     # conv weight (x2 buf)
                + 2 * (2 * Cin * bpe + Cout * 4) + (1 << 20))        # small blocks + slack

    try:                                                 # size tiles for THIS chip's VMEM
        vmem_cap = int(pltpu.get_tpu_info().vmem_capacity_bytes)
    except Exception:
        vmem_cap = 64 * 2 ** 20                          # conservative (v7x per-core VMEM)

    if block_rows is None:                               # auto: biggest tile that fits
        budget = int(vmem_cap * 0.55)
        TH = _round_up(min(max(Hout, 1), 256), HB)
        while TH > HB and step_bytes(TH) > budget:
            TH -= HB
    else:
        TH = _round_up(max(1, min(block_rows, Hout)), HB)
    R = -(-Hout // TH)                                   # row blocks
    Hout_pad = R * TH
    rows_in = Hout_pad + (HB if halo else 0)             # padded-input rows required
    vmem_limit = int(min(max(32 * 2 ** 20, 2 * step_bytes(TH)), int(vmem_cap * 0.9)))

    # NCHW -> NHWC (channels on lanes) + conv zero-pad + compute-dtype cast, fused into a
    # single materialization of xp (one HBM read of x, one write of xp).
    xp = jnp.pad(
        jnp.transpose(x, (0, 2, 3, 1)).astype(compute_dtype),
        ((0, 0), (pad, rows_in - pad - H), (pad, Wp - pad - W), (0, 0)))

    wconv = jnp.transpose(params["conv_w"].astype(jnp.float32), (2, 3, 1, 0))  # OIHW->HWIO
    wconv = wconv.reshape(sz * sz, Cin, Cout).astype(compute_dtype)            # tap-major
    bconv = params["conv_b"].astype(jnp.float32).reshape(1, Cout)
    scale3 = scale.astype(compute_dtype).reshape(1, 1, Cin)
    shift3 = shift.astype(compute_dtype).reshape(N, 1, Cin)

    kernel = functools.partial(_bn_relu_conv_kernel, sz=sz, pad=pad, H=H, W=W,
                               Wacc=Wacc, has_halo=halo > 0)

    step = TH // HB
    in_arrays = [xp]
    in_specs = [pl.BlockSpec((1, TH, Wp, Cin), lambda n, r: (n, r, 0, 0))]
    if halo:
        # Halo = the HB-row block immediately after the main TH rows of the SAME array.
        in_arrays.append(xp)
        in_specs.append(pl.BlockSpec((1, HB, Wp, Cin),
                                     lambda n, r: (n, (r + 1) * step, 0, 0)))
    in_arrays += [scale3, shift3, wconv, bconv]
    in_specs += [
        pl.BlockSpec((1, 1, Cin), lambda n, r: (0, 0, 0)),           # scale (resident)
        pl.BlockSpec((1, 1, Cin), lambda n, r: (n, 0, 0)),           # shift row for batch n
        pl.BlockSpec((sz * sz, Cin, Cout), lambda n, r: (0, 0, 0)),  # conv weight (resident)
        pl.BlockSpec((1, Cout), lambda n, r: (0, 0)),                # conv bias (resident)
    ]
    out_spec = pl.BlockSpec((1, TH, Wout, Cout), lambda n, r: (n, r, 0, 0))
    win_rows = TH + (HB if halo else 0)

    out_nhwc = pl.pallas_call(
        kernel,
        out_shape=jax.ShapeDtypeStruct((N, Hout_pad, Wout, Cout), out_dtype),
        grid=(N, R),
        in_specs=in_specs,
        out_specs=out_spec,
        scratch_shapes=[pltpu.VMEM((win_rows, Wp, Cin), compute_dtype)],
        compiler_params=pltpu.CompilerParams(
            dimension_semantics=("parallel", "parallel"),   # independent output tiles
            vmem_limit_bytes=vmem_limit),
    )(*in_arrays)

    if Hout_pad != Hout:
        out_nhwc = out_nhwc[:, :Hout]
    if output_layout == "NHWC":      # preferred when stacking these blocks (skips a pass)
        return out_nhwc
    return jnp.transpose(out_nhwc, (0, 3, 1, 2))                             # NHWC -> NCHW


def reference_forward(params, style, x, y=None, *, sz, eps=1e-5):
    """Pure-JAX reference mirroring the PyTorch forward (training-mode BN)."""
    if y is not None:
        x = x + y
    feat = style @ params["lin_w"].T + params["lin_b"]
    x = x + feat[:, :, None, None]
    mean = jnp.mean(x, axis=(0, 2, 3), keepdims=True)
    var = jnp.mean((x - mean) ** 2, axis=(0, 2, 3), keepdims=True)
    x = (x - mean) / jnp.sqrt(var + eps)
    x = x * params["bn_gamma"][None, :, None, None] + params["bn_beta"][None, :, None, None]
    x = jnp.maximum(x, 0.0)
    out = jax.lax.conv_general_dilated(
        x, params["conv_w"], window_strides=(1, 1),
        padding=[(sz // 2, sz // 2), (sz // 2, sz // 2)],
        dimension_numbers=("NCHW", "OIHW", "NCHW"))
    return out + params["conv_b"][None, :, None, None]


if __name__ == "__main__":
    N, Cin, Cout, S, H, W, sz = 2, 4, 4, 8, 16, 16, 3

    key = jax.random.PRNGKey(0)
    keys = jax.random.split(key, 9)
    params = {
        "lin_w":    0.1 * jax.random.normal(keys[0], (Cout, S), jnp.float32),
        "lin_b":    0.1 * jax.random.normal(keys[1], (Cout,), jnp.float32),
        "bn_gamma": 1.0 + 0.1 * jax.random.normal(keys[2], (Cin,), jnp.float32),
        "bn_beta":  0.1 * jax.random.normal(keys[3], (Cin,), jnp.float32),
        "conv_w":   0.1 * jax.random.normal(keys[4], (Cout, Cin, sz, sz), jnp.float32),
        "conv_b":   0.1 * jax.random.normal(keys[5], (Cout,), jnp.float32),
    }
    style = jax.random.normal(keys[6], (N, S), jnp.float32)
    x = jax.random.normal(keys[7], (N, Cin, H, W), jnp.float32)
    y = 0.1 * jax.random.normal(keys[8], (N, Cin, H, W), jnp.float32)

    ref = reference_forward(params, style, x, y=y, sz=sz)

    # Strict numerics check: f32 path.  block_rows=8 -> 2 row blocks per image, so the
    # multi-tile grid + halo path is exercised even at this small spatial size.
    out_f32 = batchconvstyle_forward(params, style, x, y=y, sz=sz,
                                     block_rows=8, compute_dtype=jnp.float32)
    out_f32 = jax.block_until_ready(out_f32)
    assert out_f32.shape == ref.shape == (N, Cout, H, W)
    assert jnp.allclose(out_f32, ref, rtol=1e-4, atol=2e-4), "f32 kernel mismatch vs reference"

    # bf16 elementwise + MXU fast path (v6e/v7x): loose sanity check vs the f32 reference.
    out_bf16 = batchconvstyle_forward(params, style, x, y=y, sz=sz,
                                      block_rows=8, compute_dtype=jnp.bfloat16)
    out_bf16 = jax.block_until_ready(out_bf16)
    assert jnp.allclose(out_bf16, ref, rtol=5e-2, atol=1.5e-1), "bf16 kernel diverged from reference"

    # Auto-tiled path (block_rows derived from the chip's VMEM capacity).
    out_auto = jax.block_until_ready(
        batchconvstyle_forward(params, style, x, y=y, sz=sz))
    assert jnp.allclose(out_auto, ref, rtol=5e-2, atol=1.5e-1), "auto-tiled kernel diverged"

    print("KERNEL_OK")
</pallas_src>

<mosaic_0001>
module attributes {stable_mosaic.version = 11 : i64} {
  func.func @_bn_relu_conv_kernel(%arg0: i32, %arg1: i32, %arg2: memref<1x8x24x4xf32, #tpu.memory_space<vmem>>, %arg3: memref<1x8x24x4xf32, #tpu.memory_space<vmem>>, %arg4: memref<1x1x4xf32, #tpu.memory_space<vmem>>, %arg5: memref<1x1x4xf32, #tpu.memory_space<vmem>>, %arg6: memref<9x4x4xf32, #tpu.memory_space<vmem>>, %arg7: memref<1x4xf32, #tpu.memory_space<vmem>>, %arg8: memref<1x8x16x4xf32, #tpu.memory_space<vmem>>, %arg9: memref<16x24x4xf32, #tpu.memory_space<vmem>>) attributes {dimension_semantics = [#tpu.dimension_semantics<parallel>, #tpu.dimension_semantics<parallel>], iteration_bounds = array<i64: 2, 2>, scalar_prefetch = 0 : i64, scratch_operands = 1 : i64, tpu.core_type = #tpu.core_type<tc>, window_params = [{transform_indices = @transform_0, window_bounds = array<i64: 1, 8, 24, 4>}, {transform_indices = @transform_1, window_bounds = array<i64: 1, 8, 24, 4>}, {pipeline_mode = #tpu.pipeline_mode<synchronous>, transform_indices = @transform_2, window_bounds = array<i64: 1, 1, 4>}, {transform_indices = @transform_3, window_bounds = array<i64: 1, 1, 4>}, {pipeline_mode = #tpu.pipeline_mode<synchronous>, transform_indices = @transform_4, window_bounds = array<i64: 9, 4, 4>}, {pipeline_mode = #tpu.pipeline_mode<synchronous>, transform_indices = @transform_5, window_bounds = array<i64: 1, 4>}, {transform_indices = @transform_6, window_bounds = array<i64: 1, 8, 16, 4>}]} {
    %c8_i32 = arith.constant 8 : i32
    %0 = arith.muli %arg1, %c8_i32 : i32
    %c0 = arith.constant 0 : index
    %c0_0 = arith.constant 0 : index
    %c0_1 = arith.constant 0 : index
    %1 = vector.load %arg4[%c0, %c0_0, %c0_1] : memref<1x1x4xf32, #tpu.memory_space<vmem>>, vector<1x1x4xf32>
    %c0_2 = arith.constant 0 : index
    %c0_3 = arith.constant 0 : index
    %c0_4 = arith.constant 0 : index
    %2 = vector.load %arg5[%c0_2, %c0_3, %c0_4] : memref<1x1x4xf32, #tpu.memory_space<vmem>>, vector<1x1x4xf32>
    %3 = tpu.iota {dimensions = array<i32: 1>} : vector<1x24x1xi32>
    %c1_i32 = arith.constant 1 : i32
    %4 = vector.broadcast %c1_i32 : i32 to vector<1x24x1xi32>
    %5 = arith.cmpi sge, %3, %4 : vector<1x24x1xi32>
    %c17_i32 = arith.constant 17 : i32
    %6 = vector.broadcast %c17_i32 : i32 to vector<1x24x1xi32>
    %7 = arith.cmpi slt, %3, %6 : vector<1x24x1xi32>
    %8 = arith.andi %5, %7 : vector<1x24x1xi1>
    %c0_5 = arith.constant 0 : index
    %c0_6 = arith.constant 0 : index
    %c0_7 = arith.constant 0 : index
    %c0_8 = arith.constant 0 : index
    %9 = vector.load %arg2[%c0_5, %c0_6, %c0_7, %c0_8] : memref<1x8x24x4xf32, #tpu.memory_space<vmem>>, vector<1x8x24x4xf32>
    %10 = vector.shape_cast %9 : vector<1x8x24x4xf32> to vector<8x24x4xf32>
    %11 = tpu.iota {dimensions = array<i32: 0>} : vector<8x1x1xi32>
    %12 = vector.broadcast %0 : i32 to vector<8x1x1xi32>
    %13 = arith.addi %12, %11 : vector<8x1x1xi32>
    %c1_i32_9 = arith.constant 1 : i32
    %14 = vector.broadcast %c1_i32_9 : i32 to vector<8x1x1xi32>
    %15 = arith.cmpi sge, %13, %14 : vector<8x1x1xi32>
    %c17_i32_10 = arith.constant 17 : i32
    %16 = vector.broadcast %c17_i32_10 : i32 to vector<8x1x1xi32>
    %17 = arith.cmpi slt, %13, %16 : vector<8x1x1xi32>
    %18 = arith.andi %15, %17 : vector<8x1x1xi1>
    %19 = vector.broadcast %1 : vector<1x1x4xf32> to vector<8x24x4xf32>
    %20 = arith.mulf %10, %19 : vector<8x24x4xf32>
    %21 = vector.broadcast %2 : vector<1x1x4xf32> to vector<8x24x4xf32>
    %22 = arith.addf %20, %21 : vector<8x24x4xf32>
    %cst = arith.constant 0.000000e+00 : f32
    %23 = vector.broadcast %cst : f32 to vector<8x24x4xf32>
    %24 = arith.maximumf %22, %23 : vector<8x24x4xf32>
    %25 = vector.broadcast %18 : vector<8x1x1xi1> to vector<8x24x1xi1>
    %26 = vector.broadcast %8 : vector<1x24x1xi1> to vector<8x24x1xi1>
    %27 = arith.andi %25, %26 : vector<8x24x1xi1>
    %c0_i32 = arith.constant 0 : i32
    %28 = arith.sitofp %c0_i32 : i32 to f32
    %29 = vector.shape_cast %27 : vector<8x24x1xi1> to vector<8x24x1xi1>
    %30 = vector.broadcast %29 : vector<8x24x1xi1> to vector<8x24x4xi1>
    %31 = vector.broadcast %28 : f32 to vector<8x24x4xf32>
    %32 = arith.select %30, %24, %31 : vector<8x24x4xi1>, vector<8x24x4xf32>
    %c0_11 = arith.constant 0 : index
    %c0_12 = arith.constant 0 : index
    %c0_13 = arith.constant 0 : index
    %33 = vector.load %arg9[%c0_11, %c0_12, %c0_13] : memref<16x24x4xf32, #tpu.memory_space<vmem>>, vector<8x24x4xf32>
    tpu.vector_store %arg9[%c0_11, %c0_12, %c0_13], %32 {strides = array<i32>} : memref<16x24x4xf32, #tpu.memory_space<vmem>>, vector<8x24x4xf32>,
    %c0_14 = arith.constant 0 : index
    %c0_15 = arith.constant 0 : index
    %c0_16 = arith.constant 0 : index
    %c0_17 = arith.constant 0 : index
    %34 = vector.load %arg3[%c0_14, %c0_15, %c0_16, %c0_17] : memref<1x8x24x4xf32, #tpu.memory_space<vmem>>, vector<1x8x24x4xf32>
    %35 = vector.shape_cast %34 : vector<1x8x24x4xf32> to vector<8x24x4xf32>
    %c8_i32_18 = arith.constant 8 : i32
    %36 = arith.addi %0, %c8_i32_18 : i32
    %37 = tpu.iota {dimensions = array<i32: 0>} : vector<8x1x1xi32>
    %38 = vector.broadcast %36 : i32 to vector<8x1x1xi32>
    %39 = arith.addi %38, %37 : vector<8x1x1xi32>
    %c1_i32_19 = arith.constant 1 : i32
    %40 = vector.broadcast %c1_i32_19 : i32 to vector<8x1x1xi32>
    %41 = arith.cmpi sge, %39, %40 : vector<8x1x1xi32>
    %c17_i32_20 = arith.constant 17 : i32
    %42 = vector.broadcast %c17_i32_20 : i32 to vector<8x1x1xi32>
    %43 = arith.cmpi slt, %39, %42 : vector<8x1x1xi32>
    %44 = arith.andi %41, %43 : vector<8x1x1xi1>
    %45 = vector.broadcast %1 : vector<1x1x4xf32> to vector<8x24x4xf32>
    %46 = arith.mulf %35, %45 : vector<8x24x4xf32>
    %47 = vector.broadcast %2 : vector<1x1x4xf32> to vector<8x24x4xf32>
    %48 = arith.addf %46, %47 : vector<8x24x4xf32>
    %cst_21 = arith.constant 0.000000e+00 : f32
    %49 = vector.broadcast %cst_21 : f32 to vector<8x24x4xf32>
    %50 = arith.maximumf %48, %49 : vector<8x24x4xf32>
    %51 = vector.broadcast %44 : vector<8x1x1xi1> to vector<8x24x1xi1>
    %52 = vector.broadcast %8 : vector<1x24x1xi1> to vector<8x24x1xi1>
    %53 = arith.andi %51, %52 : vector<8x24x1xi1>
    %c0_i32_22 = arith.constant 0 : i32
    %54 = arith.sitofp %c0_i32_22 : i32 to f32
    %55 = vector.shape_cast %53 : vector<8x24x1xi1> to vector<8x24x1xi1>
    %56 = vector.broadcast %55 : vector<8x24x1xi1> to vector<8x24x4xi1>
    %57 = vector.broadcast %54 : f32 to vector<8x24x4xf32>
    %58 = arith.select %56, %50, %57 : vector<8x24x4xi1>, vector<8x24x4xf32>
    %c8 = arith.constant 8 : index
    %c0_23 = arith.constant 0 : index
    %c0_24 = arith.constant 0 : index
    %59 = vector.load %arg9[%c8, %c0_23, %c0_24] : memref<16x24x4xf32, #tpu.memory_space<vmem>>, vector<8x24x4xf32>
    tpu.vector_store %arg9[%c8, %c0_23, %c0_24], %58 {strides = array<i32>} : memref<16x24x4xf32, #tpu.memory_space<vmem>>, vector<8x24x4xf32>,
    %cst_25 = arith.constant 0.000000e+00 : f32
    %60 = vector.broadcast %cst_25 : f32 to vector<128x4xf32>
    %c0_26 = arith.constant 0 : index
    %c0_27 = arith.constant 0 : index
    %c0_28 = arith.constant 0 : index
    %61 = vector.load %arg9[%c0_26, %c0_27, %c0_28] : memref<16x24x4xf32, #tpu.memory_space<vmem>>, vector<10x16x4xf32>
    %62 = vector.extract_strided_slice %61 {offsets = [0, 0, 0], sizes = [8, 16, 4], strides = [1, 1, 1]} : vector<10x16x4xf32> to vector<8x16x4xf32>
    %63 = vector.shape_cast %62 : vector<8x16x4xf32> to vector<128x4xf32>
    %c0_29 = arith.constant 0 : index
    %c0_30 = arith.constant 0 : index
    %c0_31 = arith.constant 0 : index
    %64 = vector.load %arg6[%c0_29, %c0_30, %c0_31] : memref<9x4x4xf32, #tpu.memory_space<vmem>>, vector<1x4x4xf32>
    %65 = vector.shape_cast %64 : vector<1x4x4xf32> to vector<4x4xf32>
    %cst_32 = arith.constant dense<0.000000e+00> : vector<128x4xf32>
    %66 = tpu.matmul %63, %65, %cst_32 {dimension_numbers = #tpu.dot_dimension_numbers<[1], [0], [0], [1], [0, 0, 1, 1], [], []>} : vector<128x4xf32>, vector<4x4xf32>, vector<128x4xf32> -> vector<128x4xf32>
    %67 = arith.addf %60, %66 : vector<128x4xf32>
    %68 = vector.extract_strided_slice %61 {offsets = [1, 0, 0], sizes = [8, 16, 4], strides = [1, 1, 1]} : vector<10x16x4xf32> to vector<8x16x4xf32>
    %69 = vector.shape_cast %68 : vector<8x16x4xf32> to vector<128x4xf32>
    %c3 = arith.constant 3 : index
    %c0_33 = arith.constant 0 : index
    %c0_34 = arith.constant 0 : index
    %70 = vector.load %arg6[%c3, %c0_33, %c0_34] : memref<9x4x4xf32, #tpu.memory_space<vmem>>, vector<1x4x4xf32>
    %71 = vector.shape_cast %70 : vector<1x4x4xf32> to vector<4x4xf32>
    %cst_35 = arith.constant dense<0.000000e+00> : vector<128x4xf32>
    %72 = tpu.matmul %69, %71, %cst_35 {dimension_numbers = #tpu.dot_dimension_numbers<[1], [0], [0], [1], [0, 0, 1, 1], [], []>} : vector<128x4xf32>, vector<4x4xf32>, vector<128x4xf32> -> vector<128x4xf32>
    %73 = arith.addf %67, %72 : vector<128x4xf32>
    %74 = vector.extract_strided_slice %61 {offsets = [2, 0, 0], sizes = [8, 16, 4], strides = [1, 1, 1]} : vector<10x16x4xf32> to vector<8x16x4xf32>
    %75 = vector.shape_cast %74 : vector<8x16x4xf32> to vector<128x4xf32>
    %c6 = arith.constant 6 : index
    %c0_36 = arith.constant 0 : index
    %c0_37 = arith.constant 0 : index
    %76 = vector.load %arg6[%c6, %c0_36, %c0_37] : memref<9x4x4xf32, #tpu.memory_space<vmem>>, vector<1x4x4xf32>
    %77 = vector.shape_cast %76 : vector<1x4x4xf32> to vector<4x4xf32>
    %cst_38 = arith.constant dense<0.000000e+00> : vector<128x4xf32>
    %78 = tpu.matmul %75, %77, %cst_38 {dimension_numbers = #tpu.dot_dimension_numbers<[1], [0], [0], [1], [0, 0, 1, 1], [], []>} : vector<128x4xf32>, vector<4x4xf32>, vector<128x4xf32> -> vector<128x4xf32>
    %79 = arith.addf %73, %78 : vector<128x4xf32>
    %c0_39 = arith.constant 0 : index
    %c1 = arith.constant 1 : index
    %c0_40 = arith.constant 0 : index
    %80 = vector.load %arg9[%c0_39, %c1, %c0_40] : memref<16x24x4xf32, #tpu.memory_space<vmem>>, vector<10x16x4xf32>
    %81 = vector.extract_strided_slice %80 {offsets = [0, 0, 0], sizes = [8, 16, 4], strides = [1, 1, 1]} : vector<10x16x4xf32> to vector<8x16x4xf32>
    %82 = vector.shape_cast %81 : vector<8x16x4xf32> to vector<128x4xf32>
    %c1_41 = arith.constant 1 : index
    %c0_42 = arith.constant 0 : index
    %c0_43 = arith.constant 0 : index
    %83 = vector.load %arg6[%c1_41, %c0_42, %c0_43] : memref<9x4x4xf32, #tpu.memory_space<vmem>>, vector<1x4x4xf32>
    %84 = vector.shape_cast %83 : vector<1x4x4xf32> to vector<4x4xf32>
    %cst_44 = arith.constant dense<0.000000e+00> : vector<128x4xf32>
    %85 = tpu.matmul %82, %84, %cst_44 {dimension_numbers = #tpu.dot_dimension_numbers<[1], [0], [0], [1], [0, 0, 1, 1], [], []>} : vector<128x4xf32>, vector<4x4xf32>, vector<128x4xf32> -> vector<128x4xf32>
    %86 = arith.addf %79, %85 : vector<128x4xf32>
    %87 = vector.extract_strided_slice %80 {offsets = [1, 0, 0], sizes = [8, 16, 4], strides = [1, 1, 1]} : vector<10x16x4xf32> to vector<8x16x4xf32>
    %88 = vector.shape_cast %87 : vector<8x16x4xf32> to vector<128x4xf32>
    %c4 = arith.constant 4 : index
    %c0_45 = arith.constant 0 : index
    %c0_46 = arith.constant 0 : index
    %89 = vector.load %arg6[%c4, %c0_45, %c0_46] : memref<9x4x4xf32, #tpu.memory_space<vmem>>, vector<1x4x4xf32>
    %90 = vector.shape_cast %89 : vector<1x4x4xf32> to vector<4x4xf32>
    %cst_47 = arith.constant dense<0.000000e+00> : vector<128x4xf32>
    %91 = tpu.matmul %88, %90, %cst_47 {dimension_numbers = #tpu.dot_dimension_numbers<[1], [0], [0], [1], [0, 0, 1, 1], [], []>} : vector<128x4xf32>, vector<4x4xf32>, vector<128x4xf32> -> vector<128x4xf32>
    %92 = arith.addf %86, %91 : vector<128x4xf32>
    %93 = vector.extract_strided_slice %80 {offsets = [2, 0, 0], sizes = [8, 16, 4], strides = [1, 1, 1]} : vector<10x16x4xf32> to vector<8x16x4xf32>
    %94 = vector.shape_cast %93 : vector<8x16x4xf32> to vector<128x4xf32>
    %c7 = arith.constant 7 : index
    %c0_48 = arith.constant 0 : index
    %c0_49 = arith.constant 0 : index
    %95 = vector.load %arg6[%c7, %c0_48, %c0_49] : memref<9x4x4xf32, #tpu.memory_space<vmem>>, vector<1x4x4xf32>
    %96 = vector.shape_cast %95 : vector<1x4x4xf32> to vector<4x4xf32>
    %cst_50 = arith.constant dense<0.000000e+00> : vector<128x4xf32>
    %97 = tpu.matmul %94, %96, %cst_50 {dimension_numbers = #tpu.dot_dimension_numbers<[1], [0], [0], [1], [0, 0, 1, 1], [], []>} : vector<128x4xf32>, vector<4x4xf32>, vector<128x4xf32> -> vector<128x4xf32>
    %98 = arith.addf %92, %97 : vector<128x4xf32>
    %c0_51 = arith.constant 0 : index
    %c2 = arith.constant 2 : index
    %c0_52 = arith.constant 0 : index
    %99 = vector.load %arg9[%c0_51, %c2, %c0_52] : memref<16x24x4xf32, #tpu.memory_space<vmem>>, vector<10x16x4xf32>
    %100 = vector.extract_strided_slice %99 {offsets = [0, 0, 0], sizes = [8, 16, 4], strides = [1, 1, 1]} : vector<10x16x4xf32> to vector<8x16x4xf32>
    %101 = vector.shape_cast %100 : vector<8x16x4xf32> to vector<128x4xf32>
    %c2_53 = arith.constant 2 : index
    %c0_54 = arith.constant 0 : index
    %c0_55 = arith.constant 0 : index
    %102 = vector.load %arg6[%c2_53, %c0_54, %c0_55] : memref<9x4x4xf32, #tpu.memory_space<vmem>>, vector<1x4x4xf32>
    %103 = vector.shape_cast %102 : vector<1x4x4xf32> to vector<4x4xf32>
    %cst_56 = arith.constant dense<0.000000e+00> : vector<128x4xf32>
    %104 = tpu.matmul %101, %103, %cst_56 {dimension_numbers = #tpu.dot_dimension_numbers<[1], [0], [0], [1], [0, 0, 1, 1], [], []>} : vector<128x4xf32>, vector<4x4xf32>, vector<128x4xf32> -> vector<128x4xf32>
    %105 = arith.addf %98, %104 : vector<128x4xf32>
    %106 = vector.extract_strided_slice %99 {offsets = [1, 0, 0], sizes = [8, 16, 4], strides = [1, 1, 1]} : vector<10x16x4xf32> to vector<8x16x4xf32>
    %107 = vector.shape_cast %106 : vector<8x16x4xf32> to vector<128x4xf32>
    %c5 = arith.constant 5 : index
    %c0_57 = arith.constant 0 : index
    %c0_58 = arith.constant 0 : index
    %108 = vector.load %arg6[%c5, %c0_57, %c0_58] : memref<9x4x4xf32, #tpu.memory_space<vmem>>, vector<1x4x4xf32>
    %109 = vector.shape_cast %108 : vector<1x4x4xf32> to vector<4x4xf32>
    %cst_59 = arith.constant dense<0.000000e+00> : vector<128x4xf32>
    %110 = tpu.matmul %107, %109, %cst_59 {dimension_numbers = #tpu.dot_dimension_numbers<[1], [0], [0], [1], [0, 0, 1, 1], [], []>} : vector<128x4xf32>, vector<4x4xf32>, vector<128x4xf32> -> vector<128x4xf32>
    %111 = arith.addf %105, %110 : vector<128x4xf32>
    %112 = vector.extract_strided_slice %99 {offsets = [2, 0, 0], sizes = [8, 16, 4], strides = [1, 1, 1]} : vector<10x16x4xf32> to vector<8x16x4xf32>
    %113 = vector.shape_cast %112 : vector<8x16x4xf32> to vector<128x4xf32>
    %c8_60 = arith.constant 8 : index
    %c0_61 = arith.constant 0 : index
    %c0_62 = arith.constant 0 : index
    %114 = vector.load %arg6[%c8_60, %c0_61, %c0_62] : memref<9x4x4xf32, #tpu.memory_space<vmem>>, vector<1x4x4xf32>
    %115 = vector.shape_cast %114 : vector<1x4x4xf32> to vector<4x4xf32>
    %cst_63 = arith.constant dense<0.000000e+00> : vector<128x4xf32>
    %116 = tpu.matmul %113, %115, %cst_63 {dimension_numbers = #tpu.dot_dimension_numbers<[1], [0], [0], [1], [0, 0, 1, 1], [], []>} : vector<128x4xf32>, vector<4x4xf32>, vector<128x4xf32> -> vector<128x4xf32>
    %117 = arith.addf %111, %116 : vector<128x4xf32>
    %c0_64 = arith.constant 0 : index
    %c0_65 = arith.constant 0 : index
    %118 = vector.load %arg7[%c0_64, %c0_65] : memref<1x4xf32, #tpu.memory_space<vmem>>, vector<1x4xf32>
    %119 = vector.broadcast %118 : vector<1x4xf32> to vector<128x4xf32>
    %120 = arith.addf %117, %119 : vector<128x4xf32>
    %121 = vector.shape_cast %120 : vector<128x4xf32> to vector<8x16x4xf32>
    %c0_66 = arith.constant 0 : index
    %c0_67 = arith.constant 0 : index
    %c0_68 = arith.constant 0 : index
    %c0_69 = arith.constant 0 : index
    %122 = vector.load %arg8[%c0_66, %c0_67, %c0_68, %c0_69] : memref<1x8x16x4xf32, #tpu.memory_space<vmem>>, vector<1x8x16x4xf32>
    %123 = vector.shape_cast %122 : vector<1x8x16x4xf32> to vector<8x16x4xf32>
    %124 = vector.shape_cast %121 : vector<8x16x4xf32> to vector<1x8x16x4xf32>
    tpu.vector_store %arg8[%c0_66, %c0_67, %c0_68, %c0_69], %124 {strides = array<i32>} : memref<1x8x16x4xf32, #tpu.memory_space<vmem>>, vector<1x8x16x4xf32>,
    return
  }
  func.func @transform_0(%arg0: i32, %arg1: i32) -> (i32, i32, i32, i32) {
    %c0_i32 = arith.constant 0 : i32
    %c0_i32_0 = arith.constant 0 : i32
    %c0_i32_1 = arith.constant 0 : i32
    return %arg0, %arg1, %c0_i32, %c0_i32_0 : i32, i32, i32, i32
  }
  func.func @transform_1(%arg0: i32, %arg1: i32) -> (i32, i32, i32, i32) {
    %c1_i32 = arith.constant 1 : i32
    %0 = arith.addi %arg1, %c1_i32 : i32
    %c1_i32_0 = arith.constant 1 : i32
    %1 = arith.muli %0, %c1_i32_0 : i32
    %c0_i32 = arith.constant 0 : i32
    %c0_i32_1 = arith.constant 0 : i32
    %c0_i32_2 = arith.constant 0 : i32
    return %arg0, %1, %c0_i32, %c0_i32_1 : i32, i32, i32, i32
  }
  func.func @transform_2(%arg0: i32, %arg1: i32) -> (i32, i32, i32) {
    %c0_i32 = arith.constant 0 : i32
    %c0_i32_0 = arith.constant 0 : i32
    %c0_i32_1 = arith.constant 0 : i32
    %c0_i32_2 = arith.constant 0 : i32
    return %c0_i32, %c0_i32_0, %c0_i32_1 : i32, i32, i32
  }
  func.func @transform_3(%arg0: i32, %arg1: i32) -> (i32, i32, i32) {
    %c0_i32 = arith.constant 0 : i32
    %c0_i32_0 = arith.constant 0 : i32
    %c0_i32_1 = arith.constant 0 : i32
    return %arg0, %c0_i32, %c0_i32_0 : i32, i32, i32
  }
  func.func @transform_4(%arg0: i32, %arg1: i32) -> (i32, i32, i32) {
    %c0_i32 = arith.constant 0 : i32
    %c0_i32_0 = arith.constant 0 : i32
    %c0_i32_1 = arith.constant 0 : i32
    %c0_i32_2 = arith.constant 0 : i32
    return %c0_i32, %c0_i32_0, %c0_i32_1 : i32, i32, i32
  }
  func.func @transform_5(%arg0: i32, %arg1: i32) -> (i32, i32) {
    %c0_i32 = arith.constant 0 : i32
    %c0_i32_0 = arith.constant 0 : i32
    %c0_i32_1 = arith.constant 0 : i32
    return %c0_i32, %c0_i32_0 : i32, i32
  }
  func.func @transform_6(%arg0: i32, %arg1: i32) -> (i32, i32, i32, i32) {
    %c0_i32 = arith.constant 0 : i32
    %c0_i32_0 = arith.constant 0 : i32
    %c0_i32_1 = arith.constant 0 : i32
    return %arg0, %arg1, %c0_i32, %c0_i32_0 : i32, i32, i32, i32
  }
}

</mosaic_0001>

<bundles_post_ra>
// kernel: tpu_custom_call.1
= control target key start
LH: loop header
LB: loop body
LE: loop exit
PB: predicated region body
PF: predicated region fallthrough
CT: control target
= control target key end

     0   :  { %s3609_s21 = smov 0   ;;  %s3611_s22 = smov 0   ;;  %s4620_s0 = inlined_call_operand.vmem [shape: f32[2,24,24,4], index: 0, kind: input, shape index: {}]   ;;  %s4621_s1 = inlined_call_operand.vmem [shape: f32[2,24,24,4], index: 1, kind: input, shape index: {}]   ;;  %s4622_s2 = inlined_call_operand.vmem [shape: f32[1,1,4], index: 2, kind: input, shape index: {}]   ;;  %s4623_s3 = inlined_call_operand.vmem [shape: f32[2,1,4], index: 3, kind: input, shape index: {}]   ;;  %s4624_s4 = inlined_call_operand.vmem [shape: f32[9,4,4], index: 4, kind: input, shape index: {}]   ;;  %s4625_s5 = inlined_call_operand.vmem [shape: f32[1,4], index: 5, kind: input, shape index: {}]   ;;  %s4626_s6 = inlined_call_operand.vmem [shape: f32[2,16,16,4], index: 6, kind: output, shape index: {}]  }
   0x1   :  { %s3613_s23 = smov 0   ;;  %s3615_s24 = smov 0  }
   0x2   :  { %s3617_s25 = smov 0  }
   0x3 LB: > { %s25_s26 = sadd.s32 1, %s3564_s23  ;;  %s28_s27 = sadd.s32 1, %s3568_s24  ;;  %s3572_s25 = sphi %s3617_s25, %s16_s25   ;;  %s3568_s24 = sphi %s3615_s24, %s4704_s24   ;;  %s3564_s23 = sphi %s3613_s23, %s4703_s23   ;;  %s3560_s22 = sphi %s3611_s22, %s4702_s22   ;;  %s3556_s21 = sphi %s3609_s21, %s4701_s21  }
   0x4   : > { %p26_p0 = scmp.ge.s32.totalorder %s25_s26, 2  ;;  %p2795_p1 = scmp.ge.s32.totalorder %s3572_s25, 1 }
   0x5   : > { %p264_p2 = scmp.lt.s32.totalorder %s3572_s25, 5 }
   0x6   : > { %s4706_s26 = smov (%p26_p0, %s25_s26), 0  ;;  %s4708_s27 = smov (!%p26_p0, %s28_s27), %s3568_s24 }
   0x7   : > { %p265_p3 = pnand %p2795_p1, %p264_p2  ;;  %p30_p4 = scmp.ge.s32.totalorder %s4708_s27, 2 }
   0x8   : > { %v2807_v0 = vld [vmem:[%s4624_s4 + $0xc] sm:$0xf] (!%p265_p3)  ;;  %vm4627_vm0 = vcmask (!%p265_p3), 1043456   ;;  %v2878_v1 = vld [vmem:[%s4624_s4 + $0x10] sm:$0xf] (!%p265_p3)  ;;  %s3647_s8 = sshll.u32 (!%p265_p3), %s3556_s21, 3  ;;  %v359_v2 = vlaneseq (!%p265_p3) }
   0x9   : > { %s4710_s27 = smov (%p30_p4, %s4708_s27), 0  ;;  %268 = sbr.rel (%p265_p3) target bundleno = 404 (0x194), region = 44 }
   0xa   : > { %3126 = vmatprep.subr.msk.mxu1 (!%p265_p3), %vm4627_vm0, %v2807_v0  ;;  %3230 = vmatprep.subr.msk.mxu0 (!%p265_p3), %vm4627_vm0, %v2878_v1  ;;  %p319_p5 = scmp.lt.s32.totalorder (!%p265_p3), %s3560_s22, 1  ;;  %p321_p6 = scmp.lt.s32.totalorder (!%p265_p3), %s3647_s8, 23  ;;  %v3654_v3 = vstv (!%p265_p3), %s3647_s8  ;;  %v3658_v4 = vshrl.u32 (!%p265_p3), %v359_v2, 7  ;;  %v3664_v6 = vld [vmem:[%s4624_s4] sm:$0xf] (!%p265_p3)  ;;  %vm630_vm9 = vcmask (!%p265_p3), 31744  }
   0xb   : > { %3127 = vmatpush3.msk.msra.mxu1 (!%p265_p3), %vm4627_vm0, %v2807_v0  ;;  %3231 = vmatpush3.msk.msra.mxu0 (!%p265_p3), %vm4627_vm0, %v2878_v1  ;;  %v397_v5 = vadd.s32 (!%p265_p3), 1, %v3654_v3  ;;  %v3669_v7 = vld [vmem:[%s4624_s4 + $0x1c] sm:$0xf] (!%p265_p3)  ;;  %v398_v8 = vadd.s32 (!%p265_p3), 2, %v3654_v3  ;;  %v399_v9 = vadd.s32 (!%p265_p3), 3, %v3654_v3  ;;  %v400_v12 = vadd.s32 (!%p265_p3), 4, %v3654_v3 }
   0xc   : > { %3152 = vmatprep.subr.msk.mxu1 (!%p265_p3), %vm4627_vm0, %v3664_v6  ;;  %3256 = vmatprep.subr.msk.mxu0 (!%p265_p3), %vm4627_vm0, %v3669_v7  ;;  %vm363_vm1 = vcmp.ge.s32.totalorder (!%p265_p3), %v3658_v4, 1  ;;  %v3683_v10 = vadd.s32 (!%p265_p3), 16, %v3658_v4  ;;  %v3692_v13 = vadd.s32 (!%p265_p3), 5, %v3654_v3  ;;  %v3708_v15 = vadd.s32 (!%p265_p3), 6, %v3654_v3  ;;  %v3715_v16 = vld [vmem:[%s4622_s2] ss:$0 sm:$0xff] (!%p265_p3) }
   0xd   : > { %vm405_vm2 = vcmp.ge.s32.totalorder (!%p265_p3), %v397_v5, 1  ;;  %vm413_vm3 = vcmp.lt.s32.totalorder (!%p265_p3), %v397_v5, 17  ;;  %vm406_vm5 = vcmp.ge.s32.totalorder (!%p265_p3), %v398_v8, 1  ;;  %vm414_vm6 = vcmp.lt.s32.totalorder (!%p265_p3), %v398_v8, 17  ;;  %s2972_s28 = sadd.s32 (!%p265_p3), 8, %s3647_s8  ;;  %p348_p8 = scmp.lt.s32.totalorder (!%p265_p3), %s3647_s8, 15 }
   0xe   : > { %vm3686_vm4 = vmand (!%p265_p3), %vm405_vm2, %vm413_vm3  ;;  %vm368_vm7 = vcmp.lt.s32.totalorder (!%p265_p3), %v3683_v10, 17  ;;  %vm407_vm11 = vcmp.ge.s32.totalorder (!%p265_p3), %v399_v9, 1  ;;  %vm415_vm12 = vcmp.lt.s32.totalorder (!%p265_p3), %v399_v9, 17  ;;  %vm408_vm14 = vcmp.ge.s32.totalorder (!%p265_p3), %v400_v12, 1  ;;  %p333_p7 = scmp.lt.s32.totalorder (!%p265_p3), %s2972_s28, 23 }
   0xf   : > { %vm3703_vm8 = vmand (!%p265_p3), %vm3686_vm4, %vm363_vm1  ;;  %vm416_vm15 = vcmp.lt.s32.totalorder (!%p265_p3), %v400_v12, 17  ;;  %vm417_vm3 = vcmp.lt.s32.totalorder (!%p265_p3), %v3692_v13, 17  ;;  %v3750_v21 = vadd.s32 (!%p265_p3), 7, %v3654_v3  ;;  %v3752_v22 = vstv (!%p265_p3), %s2972_s28 }
  0x10   : > { %s4712_s22 = smov (!%p319_p5, %s3560_s22), 1  ;;  %vm3717_vm10 = vmand %vm406_vm5, %vm414_vm6  ;;  %s4714_s28 = smov (!%p333_p7, %s2972_s28), 23 }
  0x11   : > { %s322_s13 = scalar_select %p321_p6, %s3647_s8, 23  ;;  %vm3726_vm13 = vmand %vm3686_vm4, %vm368_vm7 }
  0x12   : > { %s3491_s14 = smul.u32 72, %s4712_s22  ;;  %s344_s18 = scalar_lea.vmem %s4623_s3, %s4712_s22  ;;  %vm3743_vm5 = vmand %vm3717_vm10, %vm363_vm1 }
  0x13   : > { %s3490_s15 = smul.u32 3, %s322_s13  ;;  %v3737_v19 = vld [vmem:[%s344_s18] ss:$0 sm:$0xff]  ;;  %vm3771_vm6 = vmand %vm407_vm11, %vm415_vm12  ;;  %vm419_vm12 = vcmp.lt.s32.totalorder %v3750_v21, 17  ;;  %s4716_s8 = smov (!%p348_p8, %s3647_s8), 15 }
  0x14   : > { %vm3783_vm0 = vmand %vm3717_vm10, %vm368_vm7  ;;  %s3492_s10 = smul.u32 3, %s4714_s28 }
  0x15   : > { %s325_s19 = sadd.s32 %s3491_s14, %s3490_s15  ;;  %vm3797_vm2 = vmand %vm3771_vm6, %vm363_vm1 }
  0x16   : > { %s2797_s29 = sshll.u32 %s325_s19, 3  ;;  %vm3807_vm11 = vmand %vm408_vm14, %vm416_vm15  ;;  %s3853_s11 = sadd.s32 %s3492_s10, %s3491_s14 }
  0x17   : > { %s3735_s9 = scalar_lea.vmem %s4620_s0, %s2797_s29  ;;  %vm3825_vm14 = vmand %vm3771_vm6, %vm368_vm7  ;;  %s2799_s12 = sshll.u32 %s3853_s11, 3 }
  0x18   : > { %v375_v23 = vld [vmem:[%s3735_s9 + $0x18] sm:$0xff]  ;;  %v376_v24 = vld [vmem:[%s3735_s9 + $0x20] sm:$0xff]  ;;  %v377_v25 = vld [vmem:[%s3735_s9 + $0x28] sm:$0xff]  ;;  %s3935_s15 = scalar_lea.vmem %s4621_s1, %s2799_s12  ;;  %s2801_s11 = sshll.u32 %s4716_s8, 1 }
  0x19   : > { %v437_v26 = vmul.f32 %v3715_v16, %v375_v23  ;;  %v438_v27 = vmul.f32 %v3715_v16, %v376_v24  ;;  %v439_v28 = vmul.f32 %v3715_v16, %v377_v25  ;;  %v378_v29 = vld [vmem:[%s3735_s9 + $0x30] sm:$0xff]  ;;  %v379_v30 = vld [vmem:[%s3735_s9 + $0x38] sm:$0xff]  ;;  %v380_v31 = vld [vmem:[%s3735_s9 + $0x40] sm:$0xff]  ;;  %s2802_s12 = sshll.u32 %s4712_s22, 5 }
  0x1a   : > { %v440_v32 = vmul.f32 %v3715_v16, %v378_v29  ;;  %v441_v33 = vmul.f32 %v3715_v16, %v379_v30  ;;  %v442_v34 = vmul.f32 %v3715_v16, %v380_v31  ;;  %v381_v35 = vld [vmem:[%s3735_s9 + $0x48] sm:$0xff]  ;;  %v382_v37 = vld [vmem:[%s3735_s9 + $0x50] sm:$0xff]  ;;  %v383_v52 = vld [vmem:[%s3735_s9 + $0x58] sm:$0xff]  ;;  %s352_s13 = sadd.s32 %s2802_s12, %s2801_s11 }
  0x1b   : > { %v467_v38 = vadd.f32 %v3737_v19, %v437_v26  ;;  %v468_v39 = vadd.f32 %v3737_v19, %v438_v27  ;;  %v469_v40 = vadd.f32 %v3737_v19, %v439_v28  ;;  %v443_v42 = vmul.f32 %v3715_v16, %v381_v35  ;;  %v384_v58 = vld [vmem:[%s3735_s9 + $0x60] sm:$0xff]  ;;  %v385_v59 = vld [vmem:[%s3735_s9 + $0x68] sm:$0xff]  ;;  %v386_v60 = vld [vmem:[%s3735_s9 + $0x70] sm:$0xff]  ;;  %s2803_s14 = sshll.u32 %s352_s13, 3 }
  0x1c   : > { %v470_v43 = vadd.f32 %v3737_v19, %v440_v32  ;;  %v471_v44 = vadd.f32 %v3737_v19, %v441_v33  ;;  %v472_v45 = vadd.f32 %v3737_v19, %v442_v34  ;;  %v444_v47 = vmul.f32 %v3715_v16, %v382_v37  ;;  %v387_v2 = vld [vmem:[%s3735_s9 + $0x78] sm:$0xff]  ;;  %v388_v5 = vld [vmem:[%s3735_s9 + $0x80] sm:$0xff]  ;;  %v390_v18 = vld [vmem:[%s3735_s9 + $0x90] sm:$0xff]  ;;  %s4555_s19 = scalar_lea.vmem %s4626_s6, %s2803_s14 }
  0x1d   : > { %v491_v48 = vmax.f32 %v467_v38, 0.0  ;;  %v492_v49 = vmax.f32 %v468_v39, 0.0  ;;  %v493_v50 = vmax.f32 %v469_v40, 0.0  ;;  %v473_v51 = vadd.f32 %v3737_v19, %v443_v42  ;;  %v391_v26 = vld [vmem:[%s3735_s9 + $0x98] sm:$0xff]  ;;  %v393_v40 = vld [vmem:[%s3735_s9 + $0xa8] sm:$0xff]  ;;  %v394_v46 = vld [vmem:[%s3735_s9 + $0xb0] sm:$0xff] }
  0x1e   : > { %v494_v54 = vmax.f32 %v470_v43, 0.0  ;;  %v495_v55 = vmax.f32 %v471_v44, 0.0  ;;  %v496_v56 = vmax.f32 %v472_v45, 0.0  ;;  %v474_v57 = vadd.f32 %v3737_v19, %v444_v47 }
  0x1f   : > { %v609_v61 = vsel %vm3703_vm8, %v491_v48, 0.0  ;;  %v610_v62 = vsel %vm3686_vm4, %v492_v49, 0.0  ;;  %v611_v63 = vsel %vm3726_vm13, %v493_v50, 0.0  ;;  %v497_v0 = vmax.f32 %v473_v51, 0.0  ;;  %vm3844_vm4 = vmand %vm3807_vm11, %vm363_vm1 }
  0x20   : > { %634 = vst.msk [vmem:[#allocation2 + $0x18] sm:$0xff] %vm630_vm9, %v609_v61  ;;  %635 = vst.msk [vmem:[#allocation2 + $0x20] sm:$0xff] %vm630_vm9, %v610_v62  ;;  %v612_v8 = vsel %vm3743_vm5, %v494_v54, 0.0  ;;  %v613_v9 = vsel %vm3717_vm10, %v495_v55, 0.0  ;;  %v614_v11 = vsel %vm3783_vm0, %v496_v56, 0.0  ;;  %v498_v12 = vmax.f32 %v474_v57, 0.0 }
  0x21   : > { %636 = vst.msk [vmem:[#allocation2 + $0x28] sm:$0xff] %vm630_vm9, %v611_v63  ;;  %637 = vst.msk [vmem:[#allocation2 + $0x30] sm:$0xff] %vm630_vm9, %v612_v8  ;;  %v615_v17 = vsel %vm3797_vm2, %v497_v0, 0.0  ;;  %v445_v20 = vmul.f32 %v3715_v16, %v383_v52  ;;  %v446_v23 = vmul.f32 %v3715_v16, %v384_v58  ;;  %v447_v24 = vmul.f32 %v3715_v16, %v385_v59  ;;  %v3952_v58 = vld [vmem:[%s4624_s4 + $0x8] sm:$0xf] }
  0x22   : > { %638 = vst.msk [vmem:[#allocation2 + $0x38] sm:$0xff] %vm630_vm9, %v613_v9  ;;  %639 = vst.msk [vmem:[#allocation2 + $0x40] sm:$0xff] %vm630_vm9, %v614_v11  ;;  %vm4650_vm0 = vcmp.ge.s32.totalorder %v3692_v13, 1  ;;  %v616_v27 = vsel %vm3771_vm6, %v498_v12, 0.0  ;;  %v448_v28 = vmul.f32 %v3715_v16, %v386_v60  ;;  %v449_v29 = vmul.f32 %v3715_v16, %v387_v2  ;;  %v655_v9 = vld [vmem:[%s3935_s15] sm:$0xff] }
  0x23   : > { %vm3867_vm8 = vmand %vm4650_vm0, %vm417_vm3  ;;  %640 = vst.msk [vmem:[#allocation2 + $0x48] sm:$0xff] %vm630_vm9, %v615_v17  ;;  %v450_v30 = vmul.f32 %v3715_v16, %v388_v5  ;;  %vm4653_vm10 = vcmp.lt.s32.totalorder %v3708_v15, 17  ;;  %vm4654_vm13 = vcmp.ge.s32.totalorder %v3708_v15, 1  ;;  %v475_v31 = vadd.f32 %v3737_v19, %v445_v20  ;;  %v3987_v11 = vld [vmem:[%s4624_s4 + $0x18] sm:$0xf] }
  0x24   : > { %vm3882_vm15 = vmand %vm4654_vm13, %vm4653_vm10  ;;  %641 = vst.msk [vmem:[#allocation2 + $0x50] sm:$0xff] %vm630_vm9, %v616_v27  ;;  %v476_v32 = vadd.f32 %v3737_v19, %v446_v23  ;;  %v477_v33 = vadd.f32 %v3737_v19, %v447_v24  ;;  %v452_v15 = vmul.f32 %v3715_v16, %v390_v18  ;;  %v478_v35 = vadd.f32 %v3737_v19, %v448_v28 }
  0x25   : > { %vm3894_vm2 = vmand %vm3807_vm11, %vm368_vm7  ;;  %v479_v36 = vadd.f32 %v3737_v19, %v449_v29  ;;  %v480_v38 = vadd.f32 %v3737_v19, %v450_v30  ;;  %v453_v39 = vmul.f32 %v3715_v16, %v391_v26  ;;  %v499_v41 = vmax.f32 %v475_v31, 0.0 }
  0x26   : > { %vm3906_vm3 = vmand %vm3867_vm8, %vm363_vm1  ;;  %v500_v42 = vmax.f32 %v476_v32, 0.0  ;;  %v501_v43 = vmax.f32 %v477_v33, 0.0  ;;  %v482_v44 = vadd.f32 %v3737_v19, %v452_v15  ;;  %v502_v47 = vmax.f32 %v478_v35, 0.0 }
  0x27   : > { %vm3918_vm5 = vmand %vm3882_vm15, %vm363_vm1  ;;  %v503_v48 = vmax.f32 %v479_v36, 0.0  ;;  %v504_v49 = vmax.f32 %v480_v38, 0.0  ;;  %v483_v50 = vadd.f32 %v3737_v19, %v453_v39  ;;  %vm4663_vm6 = vcmp.ge.s32.totalorder %v3750_v21, 1  ;;  %v3937_v52 = vld [vmem:[#allocation2 + $0x18] sm:$0xff]  ;;  %v3941_v55 = vld [vmem:[#allocation2 + $0x20] sm:$0xff] }
  0x28   : > { %vm3928_vm0 = vmand %vm4663_vm6, %vm419_vm12  ;;  %v3939_v54 = vld [vmem:[#allocation2 + $0x19] sm:$0xff]  ;;  %v617_v56 = vsel %vm3825_vm14, %v499_v41, 0.0  ;;  %v618_v21 = vsel %vm3844_vm4, %v500_v42, 0.0  ;;  %v619_v57 = vsel %vm3807_vm11, %v501_v43, 0.0  ;;  %v455_v59 = vmul.f32 %v3715_v16, %v393_v40  ;;  %3128 = vmatprep.mubr.msk.f32.mxu1 %vm630_vm9, %v3937_v52  ;;  %v3959_v60 = vld [vmem:[#allocation2 + $0x21] sm:$0xff] }
  0x29   : > { %3232 = vmatprep.mubr.msk.f32.mxu0 %vm630_vm9, %v3939_v54  ;;  %v3961_v61 = vld [vmem:[#allocation2 + $0x30] sm:$0xff]  ;;  %642 = vst.msk [vmem:[#allocation2 + $0x58] sm:$0xff] %vm630_vm9, %v617_v56  ;;  %643 = vst.msk [vmem:[#allocation2 + $0x60] sm:$0xff] %vm630_vm9, %v618_v21  ;;  %v620_v53 = vsel %vm3894_vm2, %v502_v47, 0.0  ;;  %v621_v63 = vsel %vm3906_vm3, %v503_v48, 0.0  ;;  %v622_v0 = vsel %vm3867_vm8, %v504_v49, 0.0  ;;  %v456_v1 = vmul.f32 %v3715_v16, %v394_v46  ;;  %3129 = vmatmul.mubr.msk.f32.vlgmr.msra.gmra.mrb[0].mxu1 %vm630_vm9, %v3941_v55 }
  0x2a   : > { %v3963_v62 = vld [vmem:[#allocation2 + $0x31] sm:$0xff]  ;;  %644 = vst.msk [vmem:[#allocation2 + $0x68] sm:$0xff] %vm630_vm9, %v619_v57  ;;  %3233 = vmatmul.mubr.msk.f32.vlgmr.msra.gmra.mrb[0].mxu0 %vm630_vm9, %v3959_v60  ;;  %645 = vst.msk [vmem:[#allocation2 + $0x70] sm:$0xff] %vm630_vm9, %v620_v53  ;;  %v506_v2 = vmax.f32 %v482_v44, 0.0  ;;  %v507_v5 = vmax.f32 %v483_v50, 0.0  ;;  %v485_v8 = vadd.f32 %v3737_v19, %v455_v59  ;;  %vm4666_vm11 = vcmask 1043456   ;;  %3131 = vmatprep.mubr.msk.f32.mxu1 %vm630_vm9, %v3961_v61 }
  0x2b   : > { %646 = vst.msk [vmem:[#allocation2 + $0x78] sm:$0xff] %vm630_vm9, %v621_v63  ;;  %647 = vst.msk [vmem:[#allocation2 + $0x80] sm:$0xff] %vm630_vm9, %v622_v0  ;;  %3153 = vmatpush3.msk.msra.mxu1 %vm4666_vm11, %v3664_v6  ;;  %v3993_v12 = vld [vmem:[#allocation2 + $0x38] sm:$0xff]  ;;  %v486_v17 = vadd.f32 %v3737_v19, %v456_v1  ;;  %3235 = vmatprep.mubr.msk.f32.mxu0 %vm630_vm9, %v3963_v62  ;;  %v4010_v6 = vld [vmem:[#allocation2 + $0x48] sm:$0xff]  ;;  %vm688_vm4 = vcmp.ge.s32.totalorder %v3752_v22, 1  ;;  %v712_v27 = vmul.f32 %v3715_v16, %v655_v9 }
  0x2c   : > { %vm4667_vm12 = vmmov %vm4666_vm11  ;;  %v3995_v14 = vld [vmem:[#allocation2 + $0x39] sm:$0xff]  ;;  %v624_v20 = vsel %vm3918_vm5, %v506_v2, 0.0  ;;  %v625_v23 = vsel %vm3882_vm15, %v507_v5, 0.0  ;;  %v509_v24 = vmax.f32 %v485_v8, 0.0  ;;  %v4036_v29 = vld [vmem:[#allocation2 + $0x50] sm:$0xff]  ;;  %vm696_vm2 = vcmp.lt.s32.totalorder %v3752_v22, 17 }
  0x2d   : > { %3257 = vmatpush3.msk.msra.mxu0 %vm4667_vm12, %v3669_v7  ;;  %vm4001_vm14 = vmand %vm3928_vm0, %vm363_vm1  ;;  %v4012_v7 = vld [vmem:[#allocation2 + $0x49] sm:$0xff]  ;;  %649 = vst.msk [vmem:[#allocation2 + $0x90] sm:$0xff] %vm630_vm9, %v624_v20  ;;  %v510_v26 = vmax.f32 %v486_v17, 0.0  ;;  %3132 = vmatmul.mubr.msk.f32.gmra.mrb[2].mxu1 %vm630_vm9, %v3993_v12  ;;  %vm404_vm3 = vcmp.ge.s32.totalorder %v3654_v3, 1  ;;  %vm412_vm5 = vcmp.lt.s32.totalorder %v3654_v3, 17  ;;  %v736_v37 = vadd.f32 %v3737_v19, %v712_v27  ;;  %v372_v50 = vld [vmem:[%s3735_s9] sm:$0xff] }
  0x2e   : > { %vm4670_vm10 = vmmov %vm4666_vm11  ;;  %650 = vst.msk [vmem:[#allocation2 + $0x98] sm:$0xff] %vm630_vm9, %v625_v23  ;;  %3236 = vmatmul.mubr.msk.f32.gmra.mrb[2].mxu0 %vm630_vm9, %v3995_v14  ;;  %v627_v28 = vsel %vm4001_vm14, %v509_v24, 0.0  ;;  %3134 = vmatprep.mubr.msk.f32.mxu1 %vm630_vm9, %v4010_v6  ;;  %v4077_v38 = vadd.s32 1, %v3752_v22  ;;  %v4098_v22 = vld [vmem:[%s4624_s4 + $0x14] sm:$0xf]  ;;  %v656_v47 = vld [vmem:[%s3935_s15 + $0x8] sm:$0xff]  ;;  %v434_v63 = vmul.f32 %v3715_v16, %v372_v50 }
  0x2f   : > { %3282 = vmatprep.subr.msk.mxu0 %vm4670_vm10, %v3952_v58  ;;  %vm4671_vm13 = vmmov %vm4670_vm10  ;;  %3238 = vmatprep.mubr.msk.f32.mxu0 %vm630_vm9, %v4012_v7  ;;  %652 = vst.msk [vmem:[#allocation2 + $0xa8] sm:$0xff] %vm630_vm9, %v627_v28  ;;  %v628_v30 = vsel %vm3928_vm0, %v510_v26, 0.0  ;;  %v760_v40 = vmax.f32 %v736_v37, 0.0  ;;  %v389_v49 = vld [vmem:[%s3735_s9 + $0x88] sm:$0xff]  ;;  %v392_v21 = vld [vmem:[%s3735_s9 + $0xa0] sm:$0xff] }
  0x30   : > { %3178 = vmatprep.subr.msk.mxu1 %vm4671_vm13, %v3987_v11  ;;  %v4042_v31 = vld [vmem:[#allocation2 + $0x51] sm:$0xff]  ;;  %v4044_v32 = vld [vmem:[#allocation2 + $0x60] sm:$0xff]  ;;  %653 = vst.msk [vmem:[#allocation2 + $0xb0] sm:$0xff] %vm630_vm9, %v628_v30  ;;  %vm4057_vm6 = vmand %vm688_vm4, %vm696_vm2  ;;  %v451_v53 = vmul.f32 %v3715_v16, %v389_v49  ;;  %v454_v5 = vmul.f32 %v3715_v16, %v392_v21  ;;  %v464_v18 = vadd.f32 %v3737_v19, %v434_v63 }
  0x31   : > { %v4046_v33 = vld [vmem:[#allocation2 + $0x61] sm:$0xff]  ;;  %3135 = vmatmul.mubr.msk.f32.gmra.mrb[4].mxu1 %vm630_vm9, %v4036_v29  ;;  %v4067_v35 = vld [vmem:[#allocation2 + $0x69] sm:$0xff]  ;;  %vm4091_vm11 = vmand %vm4057_vm6, %vm363_vm1 }
  0x32   : > { %3239 = vmatmul.mubr.msk.f32.gmra.mrb[4].mxu0 %vm630_vm9, %v4042_v31  ;;  %3137 = vmatprep.mubr.msk.f32.mxu1 %vm630_vm9, %v4044_v32  ;;  %v4065_v15 = vld [vmem:[#allocation2 + $0x68] sm:$0xff]  ;;  %v4069_v36 = vld [vmem:[#allocation2 + $0x78] sm:$0xff]  ;;  %v4083_v39 = vld [vmem:[#allocation2 + $0x80] sm:$0xff]  ;;  %v872_v46 = vsel %vm4091_vm11, %v760_v40, 0.0  ;;  %v481_v9 = vadd.f32 %v3737_v19, %v451_v53  ;;  %v484_v27 = vadd.f32 %v3737_v19, %v454_v5  ;;  %v488_v40 = vmax.f32 %v464_v18, 0.0 }
  0x33   : > { %3241 = vmatprep.mubr.msk.f32.mxu0 %vm630_vm9, %v4046_v33  ;;  %vm4676_vm12 = vmmov %vm4670_vm10  ;;  %897 = vst.msk [vmem:[#allocation2 + $0xc0] sm:$0xff] %vm630_vm9, %v872_v46  ;;  %v4139_v48 = vld [vmem:[#allocation2 + $0x79] sm:$0xff]  ;;  %v373_v56 = vld [vmem:[%s3735_s9 + $0x8] sm:$0xff] }
  0x34   : > { %v4085_v41 = vld [vmem:[#allocation2 + $0x90] sm:$0xff]  ;;  %vm4114_vm14 = vmand %vm404_vm3, %vm412_vm5  ;;  %v395_v57 = vld [vmem:[%s3735_s9 + $0xb8] sm:$0xff]  ;;  %v435_v0 = vmul.f32 %v3715_v16, %v373_v56  ;;  %vm697_vm3 = vcmp.lt.s32.totalorder %v4077_v38, 17  ;;  %v505_v37 = vmax.f32 %v481_v9, 0.0  ;;  %v508_v50 = vmax.f32 %v484_v27, 0.0 }
  0x35   : > { %3138 = vmatmul.mubr.msk.f32.gmra.mrb[6].mxu1 %vm630_vm9, %v4065_v15  ;;  %v4108_v43 = vld [vmem:[#allocation2 + $0x98] sm:$0xff]  ;;  %vm4679_vm4 = vmmov %vm4670_vm10  ;;  %vm689_vm10 = vcmp.ge.s32.totalorder %v4077_v38, 1  ;;  %v657_v59 = vld [vmem:[%s3935_s15 + $0x10] sm:$0xff]  ;;  %v457_v8 = vmul.f32 %v3715_v16, %v395_v57 }
  0x36   : > { %3242 = vmatmul.mubr.msk.f32.gmra.mrb[6].mxu0 %vm630_vm9, %v4067_v35  ;;  %3140 = vmatprep.mubr.msk.f32.mxu1 %vm630_vm9, %v4069_v36  ;;  %v4120_v45 = vld [vmem:[#allocation2 + $0xa8] sm:$0xff]  ;;  %vm4162_vm13 = vmand %vm3867_vm8, %vm368_vm7  ;;  %v465_v25 = vadd.f32 %v3737_v19, %v435_v0  ;;  %v714_v20 = vmul.f32 %v3715_v16, %v657_v59  ;;  %v658_v23 = vld [vmem:[%s3935_s15 + $0x18] sm:$0xff] }
  0x37   : > { %3258 = vmatprep.mubr.msk.f32.mxu0 %vm630_vm9, %v3963_v62  ;;  %v4132_v3 = vld [vmem:[#allocation2 + $0xb0] sm:$0xff]  ;;  %vm4174_vm2 = vmand %vm4114_vm14, %vm363_vm1  ;;  %v487_v30 = vadd.f32 %v3737_v19, %v457_v8  ;;  %v715_v51 = vmul.f32 %v3715_v16, %v658_v23  ;;  %v660_v57 = vld [vmem:[%s3935_s15 + $0x28] sm:$0xff]  ;;  %v623_v59 = vsel %vm4162_vm13, %v505_v37, 0.0 }
  0x38   : > { %vm4188_vm8 = vmand %vm3882_vm15, %vm368_vm7  ;;  %v489_v42 = vmax.f32 %v465_v25, 0.0  ;;  %v738_v46 = vadd.f32 %v3737_v19, %v714_v20  ;;  %v606_v53 = vsel %vm4174_vm2, %v488_v40, 0.0  ;;  %648 = vst.msk [vmem:[#allocation2 + $0x88] sm:$0xff] %vm630_vm9, %v623_v59  ;;  %v717_v9 = vmul.f32 %v3715_v16, %v660_v57  ;;  %v2047_v57 = vld [vmem:[#allocation2 + $0x1a] sm:$0xff]  ;;  %v2048_v59 = vld [vmem:[#allocation2 + $0x22] sm:$0xff] }
  0x39   : > { %3141 = vmatmul.mubr.msk.f32.gmra.mrb[8].mxu1 %vm630_vm9, %v4083_v39  ;;  %vm4200_vm5 = vmand %vm3928_vm0, %vm368_vm7  ;;  %v511_v56 = vmax.f32 %v487_v30, 0.0  ;;  %631 = vst.msk [vmem:[#allocation2] sm:$0xff] %vm630_vm9, %v606_v53  ;;  %v739_v38 = vadd.f32 %v3737_v19, %v715_v51  ;;  %v4272_v30 = vld [vmem:[#allocation2 + $0x91] sm:$0xff]  ;;  %v4369_v0 = vld [vmem:[#allocation2 + $0x62] sm:$0xff] }
  0x3a   : > { %3259 = vmatmul.mubr.msk.f32.vlgmr.msra.gmra.mrb[0].mxu0 %vm630_vm9, %v3995_v14  ;;  %3143 = vmatprep.mubr.msk.f32.mxu1 %vm630_vm9, %v4085_v41  ;;  %v4181_v24 = vld [vmem:[#allocation2 + $0xc0] sm:$0xff]  ;;  %vm4212_vm15 = vmand %vm4057_vm6, %vm368_vm7  ;;  %v607_v63 = vsel %vm4114_vm14, %v489_v42, 0.0  ;;  %v762_v34 = vmax.f32 %v738_v46, 0.0  ;;  %v741_v4 = vadd.f32 %v3737_v19, %v717_v9  ;;  %v4345_v53 = vld [vmem:[#allocation2 + $0x32] sm:$0xff] }
  0x3b   : > { %3283 = vmatpush3.msk.msra.mxu0 %vm4676_vm12, %v3952_v58  ;;  %3261 = vmatprep.mubr.msk.f32.mxu0 %vm630_vm9, %v4012_v7  ;;  %v713_v58 = vmul.f32 %v3715_v16, %v656_v47  ;;  %v659_v47 = vld [vmem:[%s3935_s15 + $0x20] sm:$0xff]  ;;  %vm4230_vm0 = vmand %vm689_vm10, %vm697_vm3  ;;  %632 = vst.msk [vmem:[#allocation2 + $0x8] sm:$0xff] %vm630_vm9, %v607_v63  ;;  %v629_v2 = vsel %vm4200_vm5, %v511_v56, 0.0  ;;  %v763_v25 = vmax.f32 %v739_v38, 0.0  ;;  %v3533_v38 = vld [vmem:[%s4624_s4 + $0x10] sm:$0xf] }
  0x3c   : > { %3308 = vmatprep.subr.msk.mxu0 %vm4679_vm4, %v4098_v22  ;;  %v716_v5 = vmul.f32 %v3715_v16, %v659_v47  ;;  %654 = vst.msk [vmem:[#allocation2 + $0xb8] sm:$0xff] %vm630_vm9, %v629_v2  ;;  %v874_v8 = vsel %vm4212_vm15, %v762_v34, 0.0  ;;  %vm4259_vm11 = vmand %vm4114_vm14, %vm368_vm7  ;;  %v4292_v47 = vld [vmem:[#allocation2 + $0xa9] sm:$0xff]  ;;  %v4355_v63 = vld [vmem:[#allocation2 + $0x3a] sm:$0xff] }
  0x3d   : > { %3144 = vmatmul.mubr.msk.f32.gmra.mrb[10].mxu1 %vm630_vm9, %v4108_v43  ;;  %v737_v1 = vadd.f32 %v3737_v19, %v713_v58  ;;  %v374_v58 = vld [vmem:[%s3735_s9 + $0x10] sm:$0xff]  ;;  %899 = vst.msk [vmem:[#allocation2 + $0xd0] sm:$0xff] %vm630_vm9, %v874_v8  ;;  %vm4695_vm12 = vmmov %vm4679_vm4  ;;  %v4381_v2 = vld [vmem:[#allocation2 + $0x7a] sm:$0xff] }
  0x3e   : > { %3262 = vmatmul.mubr.msk.f32.gmra.mrb[2].mxu0 %vm630_vm9, %v4042_v31  ;;  %3146 = vmatprep.mubr.msk.f32.mxu1 %vm630_vm9, %v4120_v45  ;;  %v436_v18 = vmul.f32 %v3715_v16, %v374_v58  ;;  %v740_v17 = vadd.f32 %v3737_v19, %v716_v5  ;;  %v765_v16 = vmax.f32 %v741_v4, 0.0  ;;  %v2950_v58 = vld [vmem:[%s4624_s4 + $0x20] sm:$0xf]  ;;  %vm4696_vm14 = vmmov %vm4679_vm4  ;;  %v4367_v34 = vld [vmem:[#allocation2 + $0x52] sm:$0xff] }
  0x3f   : > { %3264 = vmatprep.mubr.msk.f32.mxu0 %vm630_vm9, %v4046_v33  ;;  %v761_v26 = vmax.f32 %v737_v1, 0.0  ;;  %v626_v1 = vsel %vm4188_vm8, %v508_v50, 0.0  ;;  %vm4697_vm10 = vmmov %vm4679_vm4  ;;  %v4394_v5 = vld [vmem:[#allocation2 + $0x92] sm:$0xff] }
  0x40   : > { %651 = vst.msk [vmem:[#allocation2 + $0xa0] sm:$0xff] %vm630_vm9, %v626_v1  ;;  %v466_v23 = vadd.f32 %v3737_v19, %v436_v18  ;;  %v4278_v19 = vld [vmem:[#allocation2 + $0x81] sm:$0xff]  ;;  %v4379_v1 = vld [vmem:[#allocation2 + $0x6a] sm:$0xff]  ;;  %vm4698_vm13 = vmmov %vm4679_vm4 }
  0x41   : > { %3147 = vmatmul.mubr.msk.f32.gmra.mrb[12].mxu1 %vm630_vm9, %v4132_v3  ;;  %v873_v49 = vsel %vm4057_vm6, %v761_v26, 0.0  ;;  %vm803_vm6 = vmand %vm4230_vm0, %vm363_vm1  ;;  %v764_v26 = vmax.f32 %v740_v17, 0.0  ;;  %v921_v10 = vld [vmem:[#allocation2] sm:$0xff] }
  0x42   : > { %3265 = vmatmul.mubr.msk.f32.gmra.mrb[4].mxu0 %vm630_vm9, %v4067_v35  ;;  %3149 = vmatprep.mubr.msk.f32.mxu1 %vm630_vm9, %v4181_v24  ;;  %898 = vst.msk [vmem:[#allocation2 + $0xc8] sm:$0xff] %vm630_vm9, %v873_v49  ;;  %v875_v27 = vsel %vm803_vm6, %v763_v25, 0.0  ;;  %vm805_vm1 = vmand %vm4230_vm0, %vm368_vm7  ;;  %v490_v28 = vmax.f32 %v466_v23, 0.0  ;;  %v922_v13 = vld [vmem:[#allocation2 + $0x8] sm:$0xff]  ;;  %v2860_v49 = vld [vmem:[%s4624_s4 + $0x4] sm:$0xf] }
  0x43   : > { %3267 = vmatprep.mubr.msk.f32.mxu0 %vm630_vm9, %v4139_v48  ;;  %900 = vst.msk [vmem:[#allocation2 + $0xd8] sm:$0xff] %vm630_vm9, %v875_v27  ;;  %v876_v37 = vsel %vm4230_vm0, %v764_v26, 0.0  ;;  %v877_v40 = vsel %vm805_vm1, %v765_v16, 0.0  ;;  %vm4694_vm7 = vmmov %vm4679_vm4  ;;  %v4306_v50 = vld [vmem:[#allocation2 + $0xb1] sm:$0xff]  ;;  %v2045_v21 = vld [vmem:[#allocation2 + $0x2] sm:$0xff] }
  0x44   : > { %901 = vst.msk [vmem:[#allocation2 + $0xe0] sm:$0xff] %vm630_vm9, %v876_v37  ;;  %v608_v42 = vsel %vm4259_vm11, %v490_v28, 0.0  ;;  %902 = vst.msk [vmem:[#allocation2 + $0xe8] sm:$0xff] %vm630_vm9, %v877_v40 }
  0x45   : > { %633 = vst.msk [vmem:[#allocation2 + $0x10] sm:$0xff] %vm630_vm9, %v608_v42  ;;  %vm4699_vm2 = vmmov %vm4679_vm4 }
  0x46   : > { %3268 = vmatmul.mubr.msk.f32.gmra.mrb[6].mxu0 %vm630_vm9, %v4278_v19  ;;  %vm4700_vm8 = vmmov %vm4699_vm2 }
  0x47   : > { %3270 = vmatprep.mubr.msk.f32.mxu0 %vm630_vm9, %v4272_v30  ;;  %v4290_v46 = vld [vmem:[#allocation2 + $0x99] sm:$0xff] }
  0x49   : > { %v4270_v44 = vld [vmem:[#allocation2 + $0xc8] sm:$0xff] }
  0x4a   : > { %3150 = vmatmul.mubr.msk.f32.gmra.mrb[14].mxu1 %vm630_vm9, %v4270_v44  ;;  %3271 = vmatmul.mubr.msk.f32.gmra.mrb[8].mxu0 %vm630_vm9, %v4290_v46  ;;  %v4308_v56 = vld [vmem:[#allocation2 + $0xc1] sm:$0xff] }
  0x4b   : > { %3154 = vmatprep.mubr.msk.f32.mxu1 %vm630_vm9, %v921_v10  ;;  %3273 = vmatprep.mubr.msk.f32.mxu0 %vm630_vm9, %v4292_v47 }
  0x4c   : > { %v2046_v51 = vld [vmem:[#allocation2 + $0xa] sm:$0xff] }
  0x4e   : > { %3155 = vmatmul.mubr.msk.f32.vlgmr.msra.gmra.mrb[0].mxu1 %vm630_vm9, %v922_v13  ;;  %3274 = vmatmul.mubr.msk.f32.gmra.mrb[10].mxu0 %vm630_vm9, %v4306_v50 }
  0x4f   : > { %3179 = vmatpush3.msk.msra.mxu1 %vm4694_vm7, %v3987_v11  ;;  %3157 = vmatprep.mubr.msk.f32.mxu1 %vm630_vm9, %v3937_v52  ;;  %v4319_v52 = vld [vmem:[#allocation2 + $0xc9] sm:$0xff]  ;;  %v1485_v11 = vld [vmem:[#allocation2 + $0xd9] sm:$0xff] }
  0x50   : > { %3204 = vmatprep.subr.msk.mxu1 %vm4695_vm12, %v2860_v49  ;;  %3276 = vmatprep.mubr.msk.f32.mxu0 %vm630_vm9, %v4308_v56 }
  0x52   : > { %3158 = vmatmul.mubr.msk.f32.gmra.mrb[2].mxu1 %vm630_vm9, %v3941_v55  ;;  %3277 = vmatmul.mubr.msk.f32.gmra.mrb[12].mxu0 %vm630_vm9, %v4319_v52  ;;  %v1486_v55 = vld [vmem:[#allocation2 + $0xe1] sm:$0xff] }
  0x53   : > { %3160 = vmatprep.mubr.msk.f32.mxu1 %vm630_vm9, %v3961_v61  ;;  %3279 = vmatprep.mubr.msk.f32.mxu0 %vm630_vm9, %v1485_v11 }
  0x56   : > { %3161 = vmatmul.mubr.msk.f32.gmra.mrb[4].mxu1 %vm630_vm9, %v3993_v12  ;;  %3280 = vmatmul.mubr.msk.f32.gmra.mrb[14].mxu0 %vm630_vm9, %v1486_v55 }
  0x57   : > { %3163 = vmatprep.mubr.msk.f32.mxu1 %vm630_vm9, %v4010_v6  ;;  %3284 = vmatprep.mubr.msk.f32.mxu0 %vm630_vm9, %v2045_v21 }
  0x5a   : > { %3164 = vmatmul.mubr.msk.f32.gmra.mrb[6].mxu1 %vm630_vm9, %v4036_v29  ;;  %3285 = vmatmul.mubr.msk.f32.vlgmr.msra.gmra.mrb[0].mxu0 %vm630_vm9, %v2046_v51 }
  0x5b   : > { %3166 = vmatprep.mubr.msk.f32.mxu1 %vm630_vm9, %v4044_v32  ;;  %3309 = vmatpush3.msk.msra.mxu0 %vm4696_vm14, %v4098_v22  ;;  %v4357_v22 = vld [vmem:[#allocation2 + $0x4a] sm:$0xff] }
  0x5c   : > { %3287 = vmatprep.mubr.msk.f32.mxu0 %vm630_vm9, %v2047_v57  ;;  %3334 = vmatprep.subr.msk.mxu0 %vm4679_vm4, %v2950_v58 }
  0x5e   : > { %3167 = vmatmul.mubr.msk.f32.gmra.mrb[8].mxu1 %vm630_vm9, %v4065_v15  ;;  %3288 = vmatmul.mubr.msk.f32.gmra.mrb[2].mxu0 %vm630_vm9, %v2048_v59 }
  0x5f   : > { %3169 = vmatprep.mubr.msk.f32.mxu1 %vm630_vm9, %v4069_v36  ;;  %3290 = vmatprep.mubr.msk.f32.mxu0 %vm630_vm9, %v4345_v53 }
  0x62   : > { %3170 = vmatmul.mubr.msk.f32.gmra.mrb[10].mxu1 %vm630_vm9, %v4083_v39  ;;  %3291 = vmatmul.mubr.msk.f32.gmra.mrb[4].mxu0 %vm630_vm9, %v4355_v63 }
  0x63   : > { %3172 = vmatprep.mubr.msk.f32.mxu1 %vm630_vm9, %v4085_v41  ;;  %3293 = vmatprep.mubr.msk.f32.mxu0 %vm630_vm9, %v4357_v22 }
  0x66   : > { %3173 = vmatmul.mubr.msk.f32.gmra.mrb[12].mxu1 %vm630_vm9, %v4108_v43  ;;  %3294 = vmatmul.mubr.msk.f32.gmra.mrb[6].mxu0 %vm630_vm9, %v4367_v34 }
  0x67   : > { %3175 = vmatprep.mubr.msk.f32.mxu1 %vm630_vm9, %v4120_v45  ;;  %3296 = vmatprep.mubr.msk.f32.mxu0 %vm630_vm9, %v4369_v0 }
  0x6a   : > { %3176 = vmatmul.mubr.msk.f32.gmra.mrb[14].mxu1 %vm630_vm9, %v4132_v3  ;;  %3297 = vmatmul.mubr.msk.f32.gmra.mrb[8].mxu0 %vm630_vm9, %v4379_v1 }
  0x6b   : > { %3180 = vmatprep.mubr.msk.f32.mxu1 %vm630_vm9, %v3961_v61  ;;  %3299 = vmatprep.mubr.msk.f32.mxu0 %vm630_vm9, %v4381_v2  ;;  %v4392_v61 = vld [vmem:[#allocation2 + $0x82] sm:$0xff] }
  0x6e   : > { %3181 = vmatmul.mubr.msk.f32.vlgmr.msra.gmra.mrb[0].mxu1 %vm630_vm9, %v3993_v12  ;;  %3300 = vmatmul.mubr.msk.f32.gmra.mrb[10].mxu0 %vm630_vm9, %v4392_v61  ;;  %v4408_v12 = vld [vmem:[#allocation2 + $0x9a] sm:$0xff] }
  0x6f   : > { %3205 = vmatpush3.msk.msra.mxu1 %vm4697_vm10, %v2860_v49  ;;  %3183 = vmatprep.mubr.msk.f32.mxu1 %vm630_vm9, %v4010_v6  ;;  %v4410_v6 = vld [vmem:[#allocation2 + $0xaa] sm:$0xff] }
  0x70   : > { %3360 = vmatprep.subr.msk.mxu1 %vm4698_vm13, %v3533_v38  ;;  %3302 = vmatprep.mubr.msk.f32.mxu0 %vm630_vm9, %v4394_v5 }
  0x72   : > { %3184 = vmatmul.mubr.msk.f32.gmra.mrb[2].mxu1 %vm630_vm9, %v4036_v29  ;;  %3303 = vmatmul.mubr.msk.f32.gmra.mrb[12].mxu0 %vm630_vm9, %v4408_v12  ;;  %v4420_v29 = vld [vmem:[#allocation2 + $0xb2] sm:$0xff] }
  0x73   : > { %3186 = vmatprep.mubr.msk.f32.mxu1 %vm630_vm9, %v4044_v32  ;;  %3305 = vmatprep.mubr.msk.f32.mxu0 %vm630_vm9, %v4410_v6  ;;  %v939_v32 = vld [vmem:[#allocation2 + $0xd8] sm:$0xff] }
  0x76   : > { %3187 = vmatmul.mubr.msk.f32.gmra.mrb[4].mxu1 %vm630_vm9, %v4065_v15  ;;  %3306 = vmatmul.mubr.msk.f32.gmra.mrb[14].mxu0 %vm630_vm9, %v4420_v29  ;;  %v940_v15 = vld [vmem:[#allocation2 + $0xe0] sm:$0xff] }
  0x77   : > { %3189 = vmatprep.mubr.msk.f32.mxu1 %vm630_vm9, %v4069_v36  ;;  %3310 = vmatprep.mubr.msk.f32.mxu0 %vm630_vm9, %v2047_v57  ;;  %v1467_v36 = vld [vmem:[#allocation2 + $0x1] sm:$0xff] }
  0x7a   : > { %3190 = vmatmul.mubr.msk.f32.gmra.mrb[6].mxu1 %vm630_vm9, %v4083_v39  ;;  %3311 = vmatmul.mubr.msk.f32.vlgmr.msra.gmra.mrb[0].mxu0 %vm630_vm9, %v2048_v59  ;;  %v1468_v39 = vld [vmem:[#allocation2 + $0x9] sm:$0xff] }
  0x7b   : > { %3192 = vmatprep.mubr.msk.f32.mxu1 %vm630_vm9, %v4085_v41  ;;  %3335 = vmatpush3.msk.msra.mxu0 %vm4699_vm2, %v2950_v58  ;;  %v2061_v41 = vld [vmem:[#allocation2 + $0xc2] sm:$0xff] }
  0x7c   : > { %3313 = vmatprep.mubr.msk.f32.mxu0 %vm630_vm9, %v4345_v53 }
  0x7e   : > { %3193 = vmatmul.mubr.msk.f32.gmra.mrb[8].mxu1 %vm630_vm9, %v4108_v43  ;;  %3314 = vmatmul.mubr.msk.f32.gmra.mrb[2].mxu0 %vm630_vm9, %v4355_v63 }
  0x7f   : > { %3195 = vmatprep.mubr.msk.f32.mxu1 %vm630_vm9, %v4120_v45  ;;  %3316 = vmatprep.mubr.msk.f32.mxu0 %vm630_vm9, %v4357_v22 }
  0x82   : > { %3196 = vmatmul.mubr.msk.f32.gmra.mrb[10].mxu1 %vm630_vm9, %v4132_v3  ;;  %3317 = vmatmul.mubr.msk.f32.gmra.mrb[4].mxu0 %vm630_vm9, %v4367_v34 }
  0x83   : > { %3198 = vmatprep.mubr.msk.f32.mxu1 %vm630_vm9, %v4181_v24  ;;  %3319 = vmatprep.mubr.msk.f32.mxu0 %vm630_vm9, %v4369_v0  ;;  %v4550_v24 = vld [vmem:[%s4625_s5] ss:$0 sm:$0xff] }
  0x86   : > { %3199 = vmatmul.mubr.msk.f32.gmra.mrb[12].mxu1 %vm630_vm9, %v4270_v44  ;;  %3320 = vmatmul.mubr.msk.f32.gmra.mrb[6].mxu0 %vm630_vm9, %v4379_v1 }
  0x87   : > { %3201 = vmatprep.mubr.msk.f32.mxu1 %vm630_vm9, %v939_v32  ;;  %3322 = vmatprep.mubr.msk.f32.mxu0 %vm630_vm9, %v4381_v2 }
  0x8a   : > { %3202 = vmatmul.mubr.msk.f32.gmra.mrb[14].mxu1 %vm630_vm9, %v940_v15  ;;  %3323 = vmatmul.mubr.msk.f32.gmra.mrb[8].mxu0 %vm630_vm9, %v4392_v61 }
  0x8b   : > { %3206 = vmatprep.mubr.msk.f32.mxu1 %vm630_vm9, %v1467_v36  ;;  %3325 = vmatprep.mubr.msk.f32.mxu0 %vm630_vm9, %v4394_v5 }
  0x8e   : > { %3207 = vmatmul.mubr.msk.f32.vlgmr.msra.gmra.mrb[0].mxu1 %vm630_vm9, %v1468_v39  ;;  %3326 = vmatmul.mubr.msk.f32.gmra.mrb[10].mxu0 %vm630_vm9, %v4408_v12 }
  0x8f   : > { %3361 = vmatpush3.msk.msra.mxu1 %vm4700_vm8, %v3533_v38  ;;  %3209 = vmatprep.mubr.msk.f32.mxu1 %vm630_vm9, %v3939_v54  ;;  %v2062_v54 = vld [vmem:[#allocation2 + $0xca] sm:$0xff] }
  0x90   : > { %3328 = vmatprep.mubr.msk.f32.mxu0 %vm630_vm9, %v4410_v6 }
  0x92   : > { %3210 = vmatmul.mubr.msk.f32.gmra.mrb[2].mxu1 %vm630_vm9, %v3959_v60  ;;  %3329 = vmatmul.mubr.msk.f32.gmra.mrb[12].mxu0 %vm630_vm9, %v4420_v29  ;;  %v2063_v60 = vld [vmem:[#allocation2 + $0xda] sm:$0xff] }
  0x93   : > { %3212 = vmatprep.mubr.msk.f32.mxu1 %vm630_vm9, %v3963_v62  ;;  %3331 = vmatprep.mubr.msk.f32.mxu0 %vm630_vm9, %v2061_v41  ;;  %v2064_v62 = vld [vmem:[#allocation2 + $0xe2] sm:$0xff] }
  0x96   : > { %3213 = vmatmul.mubr.msk.f32.gmra.mrb[4].mxu1 %vm630_vm9, %v3995_v14  ;;  %3332 = vmatmul.mubr.msk.f32.gmra.mrb[14].mxu0 %vm630_vm9, %v2062_v54 }
  0x97   : > { %3215 = vmatprep.mubr.msk.f32.mxu1 %vm630_vm9, %v4012_v7  ;;  %3336 = vmatprep.mubr.msk.f32.mxu0 %vm630_vm9, %v4345_v53 }
  0x9a   : > { %3216 = vmatmul.mubr.msk.f32.gmra.mrb[6].mxu1 %vm630_vm9, %v4042_v31  ;;  %3337 = vmatmul.mubr.msk.f32.vlgmr.msra.gmra.mrb[0].mxu0 %vm630_vm9, %v4355_v63 }
  0x9b   : > { %3218 = vmatprep.mubr.msk.f32.mxu1 %vm630_vm9, %v4046_v33  ;;  %3339 = vmatprep.mubr.msk.f32.mxu0 %vm630_vm9, %v4357_v22 }
  0x9e   : > { %3219 = vmatmul.mubr.msk.f32.gmra.mrb[8].mxu1 %vm630_vm9, %v4067_v35  ;;  %3340 = vmatmul.mubr.msk.f32.gmra.mrb[2].mxu0 %vm630_vm9, %v4367_v34 }
  0x9f   : > { %3221 = vmatprep.mubr.msk.f32.mxu1 %vm630_vm9, %v4139_v48  ;;  %3342 = vmatprep.mubr.msk.f32.mxu0 %vm630_vm9, %v4369_v0 }
  0xa2   : > { %3222 = vmatmul.mubr.msk.f32.gmra.mrb[10].mxu1 %vm630_vm9, %v4278_v19  ;;  %3343 = vmatmul.mubr.msk.f32.gmra.mrb[4].mxu0 %vm630_vm9, %v4379_v1 }
  0xa3   : > { %3224 = vmatprep.mubr.msk.f32.mxu1 %vm630_vm9, %v4272_v30  ;;  %3345 = vmatprep.mubr.msk.f32.mxu0 %vm630_vm9, %v4381_v2 }
  0xa6   : > { %3225 = vmatmul.mubr.msk.f32.gmra.mrb[12].mxu1 %vm630_vm9, %v4290_v46  ;;  %3346 = vmatmul.mubr.msk.f32.gmra.mrb[6].mxu0 %vm630_vm9, %v4392_v61 }
  0xa7   : > { %3227 = vmatprep.mubr.msk.f32.mxu1 %vm630_vm9, %v4292_v47  ;;  %3348 = vmatprep.mubr.msk.f32.mxu0 %vm630_vm9, %v4394_v5 }
  0xaa   : > { %3228 = vmatmul.mubr.msk.f32.gmra.mrb[14].mxu1 %vm630_vm9, %v4306_v50  ;;  %3349 = vmatmul.mubr.msk.f32.gmra.mrb[8].mxu0 %vm630_vm9, %v4408_v12 }
  0xab   : > { %3244 = vmatprep.mubr.msk.f32.mxu1 %vm630_vm9, %v4139_v48  ;;  %3351 = vmatprep.mubr.msk.f32.mxu0 %vm630_vm9, %v4410_v6 }
  0xae   : > { %3245 = vmatmul.mubr.msk.f32.vlgmr.msra.gmra.mrb[8].mxu1 %vm630_vm9, %v4278_v19  ;;  %3352 = vmatmul.mubr.msk.f32.gmra.mrb[10].mxu0 %vm630_vm9, %v4420_v29 }
  0xaf   : > { %3247 = vmatprep.mubr.msk.f32.mxu1 %vm630_vm9, %v4272_v30  ;;  %3354 = vmatprep.mubr.msk.f32.mxu0 %vm630_vm9, %v2061_v41 }
  0xb2   : > { %3248 = vmatmul.mubr.msk.f32.gmra.mrb[10].mxu1 %vm630_vm9, %v4290_v46  ;;  %3355 = vmatmul.mubr.msk.f32.gmra.mrb[12].mxu0 %vm630_vm9, %v2062_v54 }
  0xb3   : > { %3250 = vmatprep.mubr.msk.f32.mxu1 %vm630_vm9, %v4292_v47  ;;  %3357 = vmatprep.mubr.msk.f32.mxu0 %vm630_vm9, %v2063_v60 }
  0xb6   : > { %3251 = vmatmul.mubr.msk.f32.gmra.mrb[12].mxu1 %vm630_vm9, %v4306_v50  ;;  %3358 = vmatmul.mubr.msk.f32.gmra.mrb[14].mxu0 %vm630_vm9, %v2064_v62 }
  0xb7   : > { %3253 = vmatprep.mubr.msk.f32.mxu1 %vm630_vm9, %v4308_v56 }
  0xba   : > { %3254 = vmatmul.mubr.msk.f32.gmra.mrb[14].mxu1 %vm630_vm9, %v4319_v52 }
 0x161   : > { %v3208_v14 = vpop.f32.mrb[0].mxu1 }
 0x162   : > { %v1606_v7 = vpop.f32.mrb[1].mxu1 }
 0x165   : > { %v3211_v31 = vpop.f32.mrb[2].mxu1 }
 0x166   : > { %v1616_v33 = vpop.f32.mrb[3].mxu1 }
 0x169   : > { %v3214_v35 = vpop.f32.mrb[4].mxu1 }
 0x16a   : > { %v1626_v43 = vpop.f32.mrb[5].mxu1 }
 0x16d   : > { %v3217_v45 = vpop.f32.mrb[6].mxu1  ;;  %v3338_v48 = vpop.f32.mrb[0].mxu0 }
 0x16e   : > { %v1636_v3 = vpop.f32.mrb[7].mxu1  ;;  %v3362_v8 = vadd.f32 %v3338_v48, %v3208_v14  ;;  %v2528_v9 = vpop.f32.mrb[1].mxu0 }
 0x16f   : > { %v3363_v18 = vadd.f32 %v2528_v9, %v1606_v7 }
 0x170   : > { %v2631_v17 = vadd.f32 %v3362_v8, %v4550_v24 }
 0x171   : > { %v2630_v25 = vadd.f32 %v3363_v18, %v4550_v24  ;;  %v3341_v20 = vpop.f32.mrb[2].mxu0 }
 0x172   : > { %2647 = vst.msk [vmem:[%s4555_s19 + $0x8] sm:$0xff] %vm630_vm9, %v2631_v17  ;;  %v3364_v4 = vadd.f32 %v3341_v20, %v3211_v31  ;;  %v2538_v23 = vpop.f32.mrb[3].mxu0 }
 0x173   : > { %2646 = vst.msk [vmem:[%s4555_s19] sm:$0xff] %vm630_vm9, %v2630_v25  ;;  %v3365_v26 = vadd.f32 %v2538_v23, %v1616_v33 }
 0x174   : > { %v2633_v27 = vadd.f32 %v3364_v4, %v4550_v24 }
 0x175   : > { %v2632_v16 = vadd.f32 %v3365_v26, %v4550_v24  ;;  %v3344_v28 = vpop.f32.mrb[4].mxu0 }
 0x176   : > { %2649 = vst.msk [vmem:[%s4555_s19 + $0x18] sm:$0xff] %vm630_vm9, %v2633_v27  ;;  %v3366_v44 = vadd.f32 %v3344_v28, %v3214_v35  ;;  %v2548_v30 = vpop.f32.mrb[5].mxu0 }
 0x177   : > { %2648 = vst.msk [vmem:[%s4555_s19 + $0x10] sm:$0xff] %vm630_vm9, %v2632_v16  ;;  %v3367_v37 = vadd.f32 %v2548_v30, %v1626_v43 }
 0x178   : > { %v2635_v19 = vadd.f32 %v3366_v44, %v4550_v24 }
 0x179   : > { %v2634_v10 = vadd.f32 %v3367_v37, %v4550_v24  ;;  %v3347_v40 = vpop.f32.mrb[6].mxu0 }
 0x17a   : > { %2651 = vst.msk [vmem:[%s4555_s19 + $0x28] sm:$0xff] %vm630_vm9, %v2635_v19  ;;  %v3368_v42 = vadd.f32 %v3347_v40, %v3217_v45  ;;  %v2558_v13 = vpop.f32.mrb[7].mxu0 }
 0x17b   : > { %2650 = vst.msk [vmem:[%s4555_s19 + $0x20] sm:$0xff] %vm630_vm9, %v2634_v10  ;;  %v3369_v46 = vadd.f32 %v2558_v13, %v1636_v3 }
 0x17c   : > { %v2637_v47 = vadd.f32 %v3368_v42, %v4550_v24 }
 0x17d   : > { %v2636_v50 = vadd.f32 %v3369_v46, %v4550_v24  ;;  %v3350_v56 = vpop.f32.mrb[8].mxu0 }
 0x17e   : > { %2653 = vst.msk [vmem:[%s4555_s19 + $0x38] sm:$0xff] %vm630_vm9, %v2637_v47  ;;  %v2568_v55 = vpop.f32.mrb[9].mxu0 }
 0x17f   : > { %2652 = vst.msk [vmem:[%s4555_s19 + $0x30] sm:$0xff] %vm630_vm9, %v2636_v50 }
 0x181   : > { %v3246_v49 = vpop.f32.mrb[8].mxu1  ;;  %v3353_v59 = vpop.f32.mrb[10].mxu0 }
 0x182   : > { %v1818_v52 = vpop.f32.mrb[9].mxu1  ;;  %v3370_v11 = vadd.f32 %v3350_v56, %v3246_v49  ;;  %v2578_v22 = vpop.f32.mrb[11].mxu0 }
 0x183   : > { %v3371_v21 = vadd.f32 %v2568_v55, %v1818_v52 }
 0x184   : > { %v2639_v51 = vadd.f32 %v3370_v11, %v4550_v24 }
 0x185   : > { %v3249_v57 = vpop.f32.mrb[10].mxu1  ;;  %v2638_v58 = vadd.f32 %v3371_v21, %v4550_v24  ;;  %v3356_v61 = vpop.f32.mrb[12].mxu0 }
 0x186   : > { %v1828_v53 = vpop.f32.mrb[11].mxu1  ;;  %2655 = vst.msk [vmem:[%s4555_s19 + $0x48] sm:$0xff] %vm630_vm9, %v2639_v51  ;;  %v3372_v63 = vadd.f32 %v3353_v59, %v3249_v57  ;;  %v2588_v12 = vpop.f32.mrb[13].mxu0 }
 0x187   : > { %2654 = vst.msk [vmem:[%s4555_s19 + $0x40] sm:$0xff] %vm630_vm9, %v2638_v58  ;;  %v3373_v34 = vadd.f32 %v2578_v22, %v1828_v53 }
 0x188   : > { %v2641_v0 = vadd.f32 %v3372_v63, %v4550_v24 }
 0x189   : > { %v3252_v1 = vpop.f32.mrb[12].mxu1  ;;  %v2640_v2 = vadd.f32 %v3373_v34, %v4550_v24  ;;  %v3359_v36 = vpop.f32.mrb[14].mxu0 }
 0x18a   : > { %v1838_v5 = vpop.f32.mrb[13].mxu1  ;;  %2657 = vst.msk [vmem:[%s4555_s19 + $0x58] sm:$0xff] %vm630_vm9, %v2641_v0  ;;  %v3374_v38 = vadd.f32 %v3356_v61, %v3252_v1  ;;  %v2598_v54 = vpop.f32.mrb[15].mxu0 }
 0x18b   : > { %2656 = vst.msk [vmem:[%s4555_s19 + $0x50] sm:$0xff] %vm630_vm9, %v2640_v2  ;;  %v3375_v6 = vadd.f32 %v2588_v12, %v1838_v5 }
 0x18c   : > { %v2643_v29 = vadd.f32 %v3374_v38, %v4550_v24 }
 0x18d   : > { %v3255_v32 = vpop.f32.mrb[14].mxu1  ;;  %v2642_v15 = vadd.f32 %v3375_v6, %v4550_v24 }
 0x18e   : > { %v1848_v39 = vpop.f32.mrb[15].mxu1  ;;  %2659 = vst.msk [vmem:[%s4555_s19 + $0x68] sm:$0xff] %vm630_vm9, %v2643_v29  ;;  %v3376_v41 = vadd.f32 %v3359_v36, %v3255_v32 }
 0x18f   : > { %2658 = vst.msk [vmem:[%s4555_s19 + $0x60] sm:$0xff] %vm630_vm9, %v2642_v15  ;;  %v3377_v60 = vadd.f32 %v2598_v54, %v1848_v39 }
 0x190   : > { %v2645_v62 = vadd.f32 %v3376_v41, %v4550_v24 }
 0x191   : > { %v2644_v14 = vadd.f32 %v3377_v60, %v4550_v24 }
 0x192   : > { %2661 = vst.msk [vmem:[%s4555_s19 + $0x78] sm:$0xff] %vm630_vm9, %v2645_v62 }
 0x193   : > { %2660 = vst.msk [vmem:[%s4555_s19 + $0x70] sm:$0xff] %vm630_vm9, %v2644_v14 }
 0x194 PF: > { %s16_s25 = sadd.s32 1, %s3572_s25   ;;  %s4701_s21 = smov %s3564_s23 }
 0x195   : > { %p13_p9 = scmp.ge.s32.totalorder %s16_s25, 6   ;;  %s4702_s22 = smov %s3568_s24 }
 0x196   : > { %s4703_s23 = smov %s4706_s26  ;;  %s4704_s24 = smov %s4710_s27 }
 0x197   :  { %15 = sbr.rel (!%p13_p9) target bundleno = 3 (0x3), region = 89 }

</bundles_post_ra>
